<compile_context>
chip_gen: v7x
topology: tpu7x:2x2x1
jax: 0.10.0
libtpu: 0.0.40
codegen_flags: <defaults>
</compile_context>

<pallas_src>
import math

import jax
import jax.numpy as jnp
import numpy as np
from jax import lax
from jax.experimental import pallas as pl
from jax.experimental.pallas import tpu as pltpu


# ---------------------------------------------------------------------------
# Pallas kernel: 2-layer bidirectional LSTM, output = top-layer out[:, -1, :]
# ---------------------------------------------------------------------------
def bilstm_kernel(
    x_ref,        # (T*Bp, H)   time-major rows: row = t*Bp + b (b padded to Bp)
    w0_ref,       # (H, 8H)     [layer0-fwd gates | layer0-bwd gates]
    b0_ref,       # (1, 8H)     combined b_ih+b_hh for both layer-0 directions
    whh0_ref,     # (H, 8H)     fused recurrent weight [fwd | bwd]
    w1f_ref,      # (2H, 4H)    layer-1 forward input weight (K = 2H concat)
    b1f_ref,      # (1, 4H)
    w1r_ref,      # (2H, 4H)    layer-1 backward input weight (only T-1 needed)
    b1r_ref,      # (1, 4H)
    whh1f_ref,    # (H, 4H)
    out_ref,      # (Bp, 2H)
    xp_scr,       # (T*Bp, 8H)  hoisted gate projections (cols 0:4H reused by l1)
    l0_scr,       # (T*Bp, 2H)  layer-0 outputs: fwd in 0:H, bwd in H:2H
):
    TB, H = x_ref.shape
    Bp = out_ref.shape[0]
    T = TB // Bp
    G = 4 * H
    unroll = True if T <= 16 else 8

    def gate_nonlin(gates):
        # PyTorch gate order (i, f, g, o).
        if H % 128 == 0:
            # Lane-aligned per-gate slices: sigmoid only on i/f/o, tanh only
            # on g -> 5H transcendental lanes instead of 8H per step.
            i = jax.nn.sigmoid(gates[:, 0:H])
            f = jax.nn.sigmoid(gates[:, H:2 * H])
            g = jnp.tanh(gates[:, 2 * H:3 * H])
            o = jax.nn.sigmoid(gates[:, 3 * H:4 * H])
        else:
            # Small H: slices would be sub-lane; one full-vreg sigmoid pass +
            # one full-vreg tanh pass, then slice.
            sg = jax.nn.sigmoid(gates)
            th = jnp.tanh(gates)
            i = sg[:, 0:H]
            f = sg[:, H:2 * H]
            g = th[:, 2 * H:3 * H]
            o = sg[:, 3 * H:4 * H]
        return i, f, g, o

    # ---- hoisted layer-0 input projection: one matmul for both directions ---
    xp_scr[...] = (
        jnp.dot(x_ref[...], w0_ref[...], preferred_element_type=jnp.float32)
        + b0_ref[...]
    )

    zeros1 = jnp.zeros((Bp, H), jnp.float32)
    zeros2 = jnp.zeros((2 * Bp, H), jnp.float32)

    # ---- layer 0: fused forward + backward scans, one MXU push per step -----
    def l0_body(j, carry):
        h2, c2 = carry                                           # (2Bp, H) each
        rf = pl.ds(pl.multiple_of(j * Bp, Bp), Bp)               # timestep j
        rb = pl.ds(pl.multiple_of((T - 1 - j) * Bp, Bp), Bp)     # timestep T-1-j
        # one recurrent matmul for both directions: (2Bp,H) @ (H,8H);
        # only the diagonal (Bp,4H) blocks are used (array is row-underfilled,
        # so the off-diagonal work is free latency-wise).
        rec = jnp.dot(h2, whh0_ref[...], preferred_element_type=jnp.float32)
        gates = jnp.concatenate(
            [xp_scr[rf, 0:G] + rec[0:Bp, 0:G],
             xp_scr[rb, G:2 * G] + rec[Bp:2 * Bp, G:2 * G]], axis=0)  # (2Bp,4H)
        i, f, g, o = gate_nonlin(gates)
        c2 = f * c2 + i * g
        h2 = o * jnp.tanh(c2)
        l0_scr[rf, 0:H] = h2[0:Bp]          # forward output at time j
        l0_scr[rb, H:2 * H] = h2[Bp:2 * Bp]  # backward output at time T-1-j
        return h2, c2

    lax.fori_loop(0, T, l0_body, (zeros2, zeros2), unroll=unroll)

    # ---- hoisted layer-1 FORWARD projection only (reuses xp_scr cols 0:4H) ---
    # Layer-1 input at time t is concat(l0_fwd[t], l0_bwd[t]) = l0_scr row
    # block t, so this is a single K=2H matmul.  Backward-direction gates are
    # NOT projected for all T (only the T-1 block is ever needed, see below).
    xp_scr[:, 0:G] = (
        jnp.dot(l0_scr[...], w1f_ref[...], preferred_element_type=jnp.float32)
        + b1f_ref[...]
    )

    # ---- layer 1 forward scan; only the final hidden state is needed --------
    def l1_body(t, carry):
        h, c = carry
        r = pl.ds(pl.multiple_of(t * Bp, Bp), Bp)
        gates = xp_scr[r, 0:G] + jnp.dot(
            h, whh1f_ref[...], preferred_element_type=jnp.float32)
        i, f, g, o = gate_nonlin(gates)
        c = f * c + i * g
        h = o * jnp.tanh(c)
        return h, c

    h1f, _ = lax.fori_loop(0, T, l1_body, (zeros1, zeros1), unroll=unroll)

    # ---- layer 1 backward at position T-1 ------------------------------------
    # Position T-1 is the FIRST step of the reversed scan from the zero state,
    # so the recurrent matmul contributes exactly zero: one tiny
    # (Bp,2H)@(2H,4H) projection + one cell step is exact (whh1-reverse is
    # never needed in the kernel).
    r_last = pl.ds(pl.multiple_of((T - 1) * Bp, Bp), Bp)
    gb = (
        jnp.dot(l0_scr[r_last, :], w1r_ref[...], preferred_element_type=jnp.float32)
        + b1r_ref[...]
    )
    i, f, g, o = gate_nonlin(gb)
    c1b = i * g                    # f * c_prev == 0
    h1b = o * jnp.tanh(c1b)

    # single full-width output store
    out_ref[...] = jnp.concatenate([h1f, h1b], axis=-1)


# ---------------------------------------------------------------------------
# One-time weight packing (weights are frozen — keep this out of the hot path)
# ---------------------------------------------------------------------------
def pack_lstm_params(p):
    """Pack nn.LSTM-convention weights into the kernel layout.

    All matrices stored transposed as (in_dim, 4H); layer-0 forward/backward
    gate blocks are concatenated along columns (input AND recurrent weights)
    so both directions share one matmul; b_ih + b_hh are pre-summed.  Layer-1
    input weights keep their natural K=2H (concat) contraction dim; the
    layer-1 reverse recurrent weight is never needed.
    """
    def tr(w):
        return jnp.transpose(w, (1, 0))

    def bias(b_ih, b_hh):
        return (b_ih + b_hh).reshape(1, -1)

    return dict(
        w0=jnp.concatenate([tr(p["w_ih_l0"]), tr(p["w_ih_l0r"])], axis=1),   # (H, 8H)
        b0=jnp.concatenate([bias(p["b_ih_l0"], p["b_hh_l0"]),
                            bias(p["b_ih_l0r"], p["b_hh_l0r"])], axis=1),    # (1, 8H)
        whh0=jnp.concatenate([tr(p["w_hh_l0"]), tr(p["w_hh_l0r"])], axis=1),  # (H, 8H)
        w1f=tr(p["w_ih_l1"]),                                                # (2H, 4H)
        b1f=bias(p["b_ih_l1"], p["b_hh_l1"]),                                # (1, 4H)
        w1r=tr(p["w_ih_l1r"]),                                               # (2H, 4H)
        b1r=bias(p["b_ih_l1r"], p["b_hh_l1r"]),                              # (1, 4H)
        whh1f=tr(p["w_hh_l1"]),                                              # (H, 4H)
    )


# ---------------------------------------------------------------------------
# VMEM limit derived from actual buffer sizes, capped per chip generation
# ---------------------------------------------------------------------------
def _vmem_limit_bytes(T, Bp, H, itemsize=4):
    xp = T * Bp * 8 * H
    l0 = T * Bp * 2 * H
    x_in = T * Bp * H
    weights = (8 * H * H) + (8 * H) + (8 * H * H) + (2 * H * 4 * H) + (4 * H) \
        + (2 * H * 4 * H) + (4 * H) + (H * 4 * H)
    out = Bp * 2 * H
    need = (xp + l0 + x_in + weights + out) * itemsize
    try:
        cap = pltpu.get_tpu_info().vmem_capacity_bytes
    except Exception:
        cap = 64 * 1024 * 1024   # conservative default (v7x per-TC VMEM)
    # leave headroom under physical VMEM (56 MiB on v7x, ~112 MiB on v5e/v6e)
    return int(min(max(need + (4 << 20), 16 << 20), (cap * 7) // 8))


# ---------------------------------------------------------------------------
# Wrapper: calls the kernel on pre-packed weights
# ---------------------------------------------------------------------------
def bert_with_lstm_forward(last_hidden_state, w):
    """last_hidden_state: (B, T, H) float32 — output of the (external) BERT net.
    w: dict from pack_lstm_params (computed once; encoder/LSTM weights frozen)."""
    B, T, H = last_hidden_state.shape

    # Pad batch to a multiple of 8 so every per-timestep row block is a
    # sublane-aligned window inside the kernel. Padded rows compute harmless
    # junk (rows are independent in an LSTM) and are sliced off at the end.
    Bp = ((B + 7) // 8) * 8
    x_tm = jnp.transpose(last_hidden_state, (1, 0, 2))      # (T, B, H)
    if Bp != B:
        x_tm = jnp.pad(x_tm, ((0, 0), (0, Bp - B), (0, 0)))
    x2d = x_tm.reshape(T * Bp, H)                            # row = t*Bp + b

    kernel_inputs = (
        x2d, w["w0"], w["b0"], w["whh0"],
        w["w1f"], w["b1f"], w["w1r"], w["b1r"], w["whh1f"],
    )

    out = pl.pallas_call(
        bilstm_kernel,
        out_shape=jax.ShapeDtypeStruct((Bp, 2 * H), jnp.float32),
        in_specs=[pl.BlockSpec(memory_space=pltpu.MemorySpace.VMEM)] * len(kernel_inputs),
        out_specs=pl.BlockSpec(memory_space=pltpu.MemorySpace.VMEM),
        scratch_shapes=[
            pltpu.VMEM((T * Bp, 8 * H), jnp.float32),   # hoisted gate projections
            pltpu.VMEM((T * Bp, 2 * H), jnp.float32),   # layer-0 [fwd | bwd] outputs
        ],
        compiler_params=pltpu.CompilerParams(
            vmem_limit_bytes=_vmem_limit_bytes(T, Bp, H)),
    )(*kernel_inputs)
    return out[:B]


# ---------------------------------------------------------------------------
# Pure-JAX reference (mirrors torch.nn.LSTM semantics) for verification
# ---------------------------------------------------------------------------
def ref_bilstm_last(x, p):
    def one_dir(xs, w_ih, w_hh, b_ih, b_hh, reverse):
        B, T, _ = xs.shape
        H = w_hh.shape[1]
        h = jnp.zeros((B, H), jnp.float32)
        c = jnp.zeros((B, H), jnp.float32)
        outs = [None] * T
        order = range(T - 1, -1, -1) if reverse else range(T)
        for t in order:
            g = xs[:, t] @ w_ih.T + h @ w_hh.T + b_ih + b_hh
            i = jax.nn.sigmoid(g[:, 0:H])
            f = jax.nn.sigmoid(g[:, H:2 * H])
            gg = jnp.tanh(g[:, 2 * H:3 * H])
            o = jax.nn.sigmoid(g[:, 3 * H:4 * H])
            c = f * c + i * gg
            h = o * jnp.tanh(c)
            outs[t] = h
        return jnp.stack(outs, axis=1)

    l0 = jnp.concatenate(
        [one_dir(x, p["w_ih_l0"], p["w_hh_l0"], p["b_ih_l0"], p["b_hh_l0"], False),
         one_dir(x, p["w_ih_l0r"], p["w_hh_l0r"], p["b_ih_l0r"], p["b_hh_l0r"], True)],
        axis=-1)
    l1 = jnp.concatenate(
        [one_dir(l0, p["w_ih_l1"], p["w_hh_l1"], p["b_ih_l1"], p["b_hh_l1"], False),
         one_dir(l0, p["w_ih_l1r"], p["w_hh_l1r"], p["b_ih_l1r"], p["b_hh_l1r"], True)],
        axis=-1)
    return l1[:, -1, :]


# ---------------------------------------------------------------------------
def make_params(key, H):
    """Deterministic init matching nn.LSTM conventions (uniform(-1/sqrt(H), 1/sqrt(H)))."""
    k = 1.0 / math.sqrt(H)
    shapes = {
        # layer 0 (input size H), forward and reverse
        "w_ih_l0": (4 * H, H), "w_hh_l0": (4 * H, H), "b_ih_l0": (4 * H,), "b_hh_l0": (4 * H,),
        "w_ih_l0r": (4 * H, H), "w_hh_l0r": (4 * H, H), "b_ih_l0r": (4 * H,), "b_hh_l0r": (4 * H,),
        # layer 1 (input size 2H because bidirectional), forward and reverse
        "w_ih_l1": (4 * H, 2 * H), "w_hh_l1": (4 * H, H), "b_ih_l1": (4 * H,), "b_hh_l1": (4 * H,),
        "w_ih_l1r": (4 * H, 2 * H), "w_hh_l1r": (4 * H, H), "b_ih_l1r": (4 * H,), "b_hh_l1r": (4 * H,),
    }
    params = {}
    keys = jax.random.split(key, len(shapes))
    for (name, shape), kk in zip(shapes.items(), keys):
        params[name] = jax.random.uniform(kk, shape, jnp.float32, -k, k)
    return params


if __name__ == "__main__":
    B, T, H = 2, 8, 32  # batch, seq, hidden (BERT pooler out_features)

    root = jax.random.PRNGKey(0)
    k_x, k_p = jax.random.split(root)

    # stands in for self.net(**x)['last_hidden_state']
    last_hidden_state = jax.random.normal(k_x, (B, T, H), jnp.float32)
    params = make_params(k_p, H)

    packed = pack_lstm_params(params)         # one-time packing (frozen weights)
    forward = jax.jit(bert_with_lstm_forward)

    out = jax.block_until_ready(forward(last_hidden_state, packed))
    assert out.shape == (B, 2 * H), out.shape

    ref = ref_bilstm_last(last_hidden_state, params)
    np.testing.assert_allclose(np.asarray(out), np.asarray(ref), rtol=1e-4, atol=1e-4)

    print("KERNEL_OK")
</pallas_src>

<mosaic_0001>
module attributes {stable_mosaic.version = 11 : i64} {
  func.func @bilstm_kernel(%arg0: memref<64x32xf32, #tpu.memory_space<vmem>>, %arg1: memref<32x256xf32, #tpu.memory_space<vmem>>, %arg2: memref<1x256xf32, #tpu.memory_space<vmem>>, %arg3: memref<32x256xf32, #tpu.memory_space<vmem>>, %arg4: memref<64x128xf32, #tpu.memory_space<vmem>>, %arg5: memref<1x128xf32, #tpu.memory_space<vmem>>, %arg6: memref<64x128xf32, #tpu.memory_space<vmem>>, %arg7: memref<1x128xf32, #tpu.memory_space<vmem>>, %arg8: memref<32x128xf32, #tpu.memory_space<vmem>>, %arg9: memref<8x64xf32, #tpu.memory_space<vmem>>, %arg10: memref<64x256xf32, #tpu.memory_space<vmem>>, %arg11: memref<64x64xf32, #tpu.memory_space<vmem>>) attributes {dimension_semantics = [], scalar_prefetch = 0 : i64, scratch_operands = 2 : i64, tpu.core_type = #tpu.core_type<tc>} {
    %c0 = arith.constant 0 : index
    %c0_0 = arith.constant 0 : index
    %0 = vector.load %arg0[%c0, %c0_0] : memref<64x32xf32, #tpu.memory_space<vmem>>, vector<64x32xf32>
    %c0_1 = arith.constant 0 : index
    %c0_2 = arith.constant 0 : index
    %1 = vector.load %arg1[%c0_1, %c0_2] : memref<32x256xf32, #tpu.memory_space<vmem>>, vector<32x256xf32>
    %cst = arith.constant dense<0.000000e+00> : vector<64x256xf32>
    %2 = tpu.matmul %0, %1, %cst {dimension_numbers = #tpu.dot_dimension_numbers<[1], [0], [0], [1], [0, 0, 1, 1], [], []>} : vector<64x32xf32>, vector<32x256xf32>, vector<64x256xf32> -> vector<64x256xf32>
    %c0_3 = arith.constant 0 : index
    %c0_4 = arith.constant 0 : index
    %3 = vector.load %arg2[%c0_3, %c0_4] : memref<1x256xf32, #tpu.memory_space<vmem>>, vector<1x256xf32>
    %4 = vector.broadcast %3 : vector<1x256xf32> to vector<64x256xf32>
    %5 = arith.addf %2, %4 : vector<64x256xf32>
    %c0_5 = arith.constant 0 : index
    %c0_6 = arith.constant 0 : index
    %6 = vector.load %arg10[%c0_5, %c0_6] : memref<64x256xf32, #tpu.memory_space<vmem>>, vector<64x256xf32>
    tpu.vector_store %arg10[%c0_5, %c0_6], %5 {strides = array<i32>} : memref<64x256xf32, #tpu.memory_space<vmem>>, vector<64x256xf32>,
    %cst_7 = arith.constant 0.000000e+00 : f32
    %7 = vector.broadcast %cst_7 : f32 to vector<8x32xf32>
    %cst_8 = arith.constant 0.000000e+00 : f32
    %8 = vector.broadcast %cst_8 : f32 to vector<16x32xf32>
    %c0_i32 = arith.constant 0 : i32
    %c8_i32 = arith.constant 8 : i32
    %9 = arith.muli %c0_i32, %c8_i32 : i32
    %10 = tpu.assume_multiple %9, 8 : i32
    %c7_i32 = arith.constant 7 : i32
    %11 = arith.subi %c7_i32, %c0_i32 : i32
    %c8_i32_9 = arith.constant 8 : i32
    %12 = arith.muli %11, %c8_i32_9 : i32
    %13 = tpu.assume_multiple %12, 8 : i32
    %c0_10 = arith.constant 0 : index
    %c0_11 = arith.constant 0 : index
    %14 = vector.load %arg3[%c0_10, %c0_11] : memref<32x256xf32, #tpu.memory_space<vmem>>, vector<32x256xf32>
    %cst_12 = arith.constant dense<0.000000e+00> : vector<16x256xf32>
    %15 = tpu.matmul %8, %14, %cst_12 {dimension_numbers = #tpu.dot_dimension_numbers<[1], [0], [0], [1], [0, 0, 1, 1], [], []>} : vector<16x32xf32>, vector<32x256xf32>, vector<16x256xf32> -> vector<16x256xf32>
    %16 = arith.index_cast %10 : i32 to index
    %c0_13 = arith.constant 0 : index
    %17 = vector.load %arg10[%16, %c0_13] : memref<64x256xf32, #tpu.memory_space<vmem>>, vector<8x128xf32>
    %18 = vector.extract_strided_slice %15 {offsets = [0, 0], sizes = [8, 128], strides = [1, 1]} : vector<16x256xf32> to vector<8x128xf32>
    %19 = arith.addf %17, %18 : vector<8x128xf32>
    %20 = arith.index_cast %13 : i32 to index
    %c128 = arith.constant 128 : index
    %21 = vector.load %arg10[%20, %c128] : memref<64x256xf32, #tpu.memory_space<vmem>>, vector<8x128xf32>
    %22 = vector.extract_strided_slice %15 {offsets = [8, 128], sizes = [8, 128], strides = [1, 1]} : vector<16x256xf32> to vector<8x128xf32>
    %23 = arith.addf %21, %22 : vector<8x128xf32>
    %24 = tpu.concatenate %19, %23 in 0 : vector<8x128xf32>, vector<8x128xf32> -> vector<16x128xf32>
    %25 = arith.negf %24 : vector<16x128xf32>
    %26 = math.exp %25 : vector<16x128xf32>
    %cst_14 = arith.constant 1.000000e+00 : f32
    %27 = vector.broadcast %cst_14 : f32 to vector<16x128xf32>
    %28 = arith.addf %27, %26 : vector<16x128xf32>
    %29 = arith.divf %27, %28 : vector<16x128xf32>
    %30 = math.tanh %24 : vector<16x128xf32>
    %31 = vector.extract_strided_slice %29 {offsets = [0, 0], sizes = [16, 32], strides = [1, 1]} : vector<16x128xf32> to vector<16x32xf32>
    %32 = vector.extract_strided_slice %29 {offsets = [0, 32], sizes = [16, 32], strides = [1, 1]} : vector<16x128xf32> to vector<16x32xf32>
    %33 = vector.extract_strided_slice %30 {offsets = [0, 64], sizes = [16, 32], strides = [1, 1]} : vector<16x128xf32> to vector<16x32xf32>
    %34 = vector.extract_strided_slice %29 {offsets = [0, 96], sizes = [16, 32], strides = [1, 1]} : vector<16x128xf32> to vector<16x32xf32>
    %35 = arith.mulf %32, %8 : vector<16x32xf32>
    %36 = arith.mulf %31, %33 : vector<16x32xf32>
    %37 = arith.addf %35, %36 : vector<16x32xf32>
    %38 = math.tanh %37 : vector<16x32xf32>
    %39 = arith.mulf %34, %38 : vector<16x32xf32>
    %40 = vector.extract_strided_slice %39 {offsets = [0, 0], sizes = [8, 32], strides = [1, 1]} : vector<16x32xf32> to vector<8x32xf32>
    %41 = arith.index_cast %10 : i32 to index
    %c0_15 = arith.constant 0 : index
    %42 = vector.load %arg11[%41, %c0_15] : memref<64x64xf32, #tpu.memory_space<vmem>>, vector<8x32xf32>
    tpu.vector_store %arg11[%41, %c0_15], %40 {strides = array<i32>} : memref<64x64xf32, #tpu.memory_space<vmem>>, vector<8x32xf32>,
    %43 = vector.extract_strided_slice %39 {offsets = [8, 0], sizes = [8, 32], strides = [1, 1]} : vector<16x32xf32> to vector<8x32xf32>
    %44 = arith.index_cast %13 : i32 to index
    %c32 = arith.constant 32 : index
    %45 = vector.load %arg11[%44, %c32] : memref<64x64xf32, #tpu.memory_space<vmem>>, vector<8x32xf32>
    tpu.vector_store %arg11[%44, %c32], %43 {strides = array<i32>} : memref<64x64xf32, #tpu.memory_space<vmem>>, vector<8x32xf32>,
    %c1_i32 = arith.constant 1 : i32
    %c8_i32_16 = arith.constant 8 : i32
    %46 = arith.muli %c1_i32, %c8_i32_16 : i32
    %47 = tpu.assume_multiple %46, 8 : i32
    %c7_i32_17 = arith.constant 7 : i32
    %48 = arith.subi %c7_i32_17, %c1_i32 : i32
    %c8_i32_18 = arith.constant 8 : i32
    %49 = arith.muli %48, %c8_i32_18 : i32
    %50 = tpu.assume_multiple %49, 8 : i32
    %c0_19 = arith.constant 0 : index
    %c0_20 = arith.constant 0 : index
    %51 = vector.load %arg3[%c0_19, %c0_20] : memref<32x256xf32, #tpu.memory_space<vmem>>, vector<32x256xf32>
    %cst_21 = arith.constant dense<0.000000e+00> : vector<16x256xf32>
    %52 = tpu.matmul %39, %51, %cst_21 {dimension_numbers = #tpu.dot_dimension_numbers<[1], [0], [0], [1], [0, 0, 1, 1], [], []>} : vector<16x32xf32>, vector<32x256xf32>, vector<16x256xf32> -> vector<16x256xf32>
    %53 = arith.index_cast %47 : i32 to index
    %c0_22 = arith.constant 0 : index
    %54 = vector.load %arg10[%53, %c0_22] : memref<64x256xf32, #tpu.memory_space<vmem>>, vector<8x128xf32>
    %55 = vector.extract_strided_slice %52 {offsets = [0, 0], sizes = [8, 128], strides = [1, 1]} : vector<16x256xf32> to vector<8x128xf32>
    %56 = arith.addf %54, %55 : vector<8x128xf32>
    %57 = arith.index_cast %50 : i32 to index
    %c128_23 = arith.constant 128 : index
    %58 = vector.load %arg10[%57, %c128_23] : memref<64x256xf32, #tpu.memory_space<vmem>>, vector<8x128xf32>
    %59 = vector.extract_strided_slice %52 {offsets = [8, 128], sizes = [8, 128], strides = [1, 1]} : vector<16x256xf32> to vector<8x128xf32>
    %60 = arith.addf %58, %59 : vector<8x128xf32>
    %61 = tpu.concatenate %56, %60 in 0 : vector<8x128xf32>, vector<8x128xf32> -> vector<16x128xf32>
    %62 = arith.negf %61 : vector<16x128xf32>
    %63 = math.exp %62 : vector<16x128xf32>
    %cst_24 = arith.constant 1.000000e+00 : f32
    %64 = vector.broadcast %cst_24 : f32 to vector<16x128xf32>
    %65 = arith.addf %64, %63 : vector<16x128xf32>
    %66 = arith.divf %64, %65 : vector<16x128xf32>
    %67 = math.tanh %61 : vector<16x128xf32>
    %68 = vector.extract_strided_slice %66 {offsets = [0, 0], sizes = [16, 32], strides = [1, 1]} : vector<16x128xf32> to vector<16x32xf32>
    %69 = vector.extract_strided_slice %66 {offsets = [0, 32], sizes = [16, 32], strides = [1, 1]} : vector<16x128xf32> to vector<16x32xf32>
    %70 = vector.extract_strided_slice %67 {offsets = [0, 64], sizes = [16, 32], strides = [1, 1]} : vector<16x128xf32> to vector<16x32xf32>
    %71 = vector.extract_strided_slice %66 {offsets = [0, 96], sizes = [16, 32], strides = [1, 1]} : vector<16x128xf32> to vector<16x32xf32>
    %72 = arith.mulf %69, %37 : vector<16x32xf32>
    %73 = arith.mulf %68, %70 : vector<16x32xf32>
    %74 = arith.addf %72, %73 : vector<16x32xf32>
    %75 = math.tanh %74 : vector<16x32xf32>
    %76 = arith.mulf %71, %75 : vector<16x32xf32>
    %77 = vector.extract_strided_slice %76 {offsets = [0, 0], sizes = [8, 32], strides = [1, 1]} : vector<16x32xf32> to vector<8x32xf32>
    %78 = arith.index_cast %47 : i32 to index
    %c0_25 = arith.constant 0 : index
    %79 = vector.load %arg11[%78, %c0_25] : memref<64x64xf32, #tpu.memory_space<vmem>>, vector<8x32xf32>
    tpu.vector_store %arg11[%78, %c0_25], %77 {strides = array<i32>} : memref<64x64xf32, #tpu.memory_space<vmem>>, vector<8x32xf32>,
    %80 = vector.extract_strided_slice %76 {offsets = [8, 0], sizes = [8, 32], strides = [1, 1]} : vector<16x32xf32> to vector<8x32xf32>
    %81 = arith.index_cast %50 : i32 to index
    %c32_26 = arith.constant 32 : index
    %82 = vector.load %arg11[%81, %c32_26] : memref<64x64xf32, #tpu.memory_space<vmem>>, vector<8x32xf32>
    tpu.vector_store %arg11[%81, %c32_26], %80 {strides = array<i32>} : memref<64x64xf32, #tpu.memory_space<vmem>>, vector<8x32xf32>,
    %c2_i32 = arith.constant 2 : i32
    %c8_i32_27 = arith.constant 8 : i32
    %83 = arith.muli %c2_i32, %c8_i32_27 : i32
    %84 = tpu.assume_multiple %83, 8 : i32
    %c7_i32_28 = arith.constant 7 : i32
    %85 = arith.subi %c7_i32_28, %c2_i32 : i32
    %c8_i32_29 = arith.constant 8 : i32
    %86 = arith.muli %85, %c8_i32_29 : i32
    %87 = tpu.assume_multiple %86, 8 : i32
    %c0_30 = arith.constant 0 : index
    %c0_31 = arith.constant 0 : index
    %88 = vector.load %arg3[%c0_30, %c0_31] : memref<32x256xf32, #tpu.memory_space<vmem>>, vector<32x256xf32>
    %cst_32 = arith.constant dense<0.000000e+00> : vector<16x256xf32>
    %89 = tpu.matmul %76, %88, %cst_32 {dimension_numbers = #tpu.dot_dimension_numbers<[1], [0], [0], [1], [0, 0, 1, 1], [], []>} : vector<16x32xf32>, vector<32x256xf32>, vector<16x256xf32> -> vector<16x256xf32>
    %90 = arith.index_cast %84 : i32 to index
    %c0_33 = arith.constant 0 : index
    %91 = vector.load %arg10[%90, %c0_33] : memref<64x256xf32, #tpu.memory_space<vmem>>, vector<8x128xf32>
    %92 = vector.extract_strided_slice %89 {offsets = [0, 0], sizes = [8, 128], strides = [1, 1]} : vector<16x256xf32> to vector<8x128xf32>
    %93 = arith.addf %91, %92 : vector<8x128xf32>
    %94 = arith.index_cast %87 : i32 to index
    %c128_34 = arith.constant 128 : index
    %95 = vector.load %arg10[%94, %c128_34] : memref<64x256xf32, #tpu.memory_space<vmem>>, vector<8x128xf32>
    %96 = vector.extract_strided_slice %89 {offsets = [8, 128], sizes = [8, 128], strides = [1, 1]} : vector<16x256xf32> to vector<8x128xf32>
    %97 = arith.addf %95, %96 : vector<8x128xf32>
    %98 = tpu.concatenate %93, %97 in 0 : vector<8x128xf32>, vector<8x128xf32> -> vector<16x128xf32>
    %99 = arith.negf %98 : vector<16x128xf32>
    %100 = math.exp %99 : vector<16x128xf32>
    %cst_35 = arith.constant 1.000000e+00 : f32
    %101 = vector.broadcast %cst_35 : f32 to vector<16x128xf32>
    %102 = arith.addf %101, %100 : vector<16x128xf32>
    %103 = arith.divf %101, %102 : vector<16x128xf32>
    %104 = math.tanh %98 : vector<16x128xf32>
    %105 = vector.extract_strided_slice %103 {offsets = [0, 0], sizes = [16, 32], strides = [1, 1]} : vector<16x128xf32> to vector<16x32xf32>
    %106 = vector.extract_strided_slice %103 {offsets = [0, 32], sizes = [16, 32], strides = [1, 1]} : vector<16x128xf32> to vector<16x32xf32>
    %107 = vector.extract_strided_slice %104 {offsets = [0, 64], sizes = [16, 32], strides = [1, 1]} : vector<16x128xf32> to vector<16x32xf32>
    %108 = vector.extract_strided_slice %103 {offsets = [0, 96], sizes = [16, 32], strides = [1, 1]} : vector<16x128xf32> to vector<16x32xf32>
    %109 = arith.mulf %106, %74 : vector<16x32xf32>
    %110 = arith.mulf %105, %107 : vector<16x32xf32>
    %111 = arith.addf %109, %110 : vector<16x32xf32>
    %112 = math.tanh %111 : vector<16x32xf32>
    %113 = arith.mulf %108, %112 : vector<16x32xf32>
    %114 = vector.extract_strided_slice %113 {offsets = [0, 0], sizes = [8, 32], strides = [1, 1]} : vector<16x32xf32> to vector<8x32xf32>
    %115 = arith.index_cast %84 : i32 to index
    %c0_36 = arith.constant 0 : index
    %116 = vector.load %arg11[%115, %c0_36] : memref<64x64xf32, #tpu.memory_space<vmem>>, vector<8x32xf32>
    tpu.vector_store %arg11[%115, %c0_36], %114 {strides = array<i32>} : memref<64x64xf32, #tpu.memory_space<vmem>>, vector<8x32xf32>,
    %117 = vector.extract_strided_slice %113 {offsets = [8, 0], sizes = [8, 32], strides = [1, 1]} : vector<16x32xf32> to vector<8x32xf32>
    %118 = arith.index_cast %87 : i32 to index
    %c32_37 = arith.constant 32 : index
    %119 = vector.load %arg11[%118, %c32_37] : memref<64x64xf32, #tpu.memory_space<vmem>>, vector<8x32xf32>
    tpu.vector_store %arg11[%118, %c32_37], %117 {strides = array<i32>} : memref<64x64xf32, #tpu.memory_space<vmem>>, vector<8x32xf32>,
    %c3_i32 = arith.constant 3 : i32
    %c8_i32_38 = arith.constant 8 : i32
    %120 = arith.muli %c3_i32, %c8_i32_38 : i32
    %121 = tpu.assume_multiple %120, 8 : i32
    %c7_i32_39 = arith.constant 7 : i32
    %122 = arith.subi %c7_i32_39, %c3_i32 : i32
    %c8_i32_40 = arith.constant 8 : i32
    %123 = arith.muli %122, %c8_i32_40 : i32
    %124 = tpu.assume_multiple %123, 8 : i32
    %c0_41 = arith.constant 0 : index
    %c0_42 = arith.constant 0 : index
    %125 = vector.load %arg3[%c0_41, %c0_42] : memref<32x256xf32, #tpu.memory_space<vmem>>, vector<32x256xf32>
    %cst_43 = arith.constant dense<0.000000e+00> : vector<16x256xf32>
    %126 = tpu.matmul %113, %125, %cst_43 {dimension_numbers = #tpu.dot_dimension_numbers<[1], [0], [0], [1], [0, 0, 1, 1], [], []>} : vector<16x32xf32>, vector<32x256xf32>, vector<16x256xf32> -> vector<16x256xf32>
    %127 = arith.index_cast %121 : i32 to index
    %c0_44 = arith.constant 0 : index
    %128 = vector.load %arg10[%127, %c0_44] : memref<64x256xf32, #tpu.memory_space<vmem>>, vector<8x128xf32>
    %129 = vector.extract_strided_slice %126 {offsets = [0, 0], sizes = [8, 128], strides = [1, 1]} : vector<16x256xf32> to vector<8x128xf32>
    %130 = arith.addf %128, %129 : vector<8x128xf32>
    %131 = arith.index_cast %124 : i32 to index
    %c128_45 = arith.constant 128 : index
    %132 = vector.load %arg10[%131, %c128_45] : memref<64x256xf32, #tpu.memory_space<vmem>>, vector<8x128xf32>
    %133 = vector.extract_strided_slice %126 {offsets = [8, 128], sizes = [8, 128], strides = [1, 1]} : vector<16x256xf32> to vector<8x128xf32>
    %134 = arith.addf %132, %133 : vector<8x128xf32>
    %135 = tpu.concatenate %130, %134 in 0 : vector<8x128xf32>, vector<8x128xf32> -> vector<16x128xf32>
    %136 = arith.negf %135 : vector<16x128xf32>
    %137 = math.exp %136 : vector<16x128xf32>
    %cst_46 = arith.constant 1.000000e+00 : f32
    %138 = vector.broadcast %cst_46 : f32 to vector<16x128xf32>
    %139 = arith.addf %138, %137 : vector<16x128xf32>
    %140 = arith.divf %138, %139 : vector<16x128xf32>
    %141 = math.tanh %135 : vector<16x128xf32>
    %142 = vector.extract_strided_slice %140 {offsets = [0, 0], sizes = [16, 32], strides = [1, 1]} : vector<16x128xf32> to vector<16x32xf32>
    %143 = vector.extract_strided_slice %140 {offsets = [0, 32], sizes = [16, 32], strides = [1, 1]} : vector<16x128xf32> to vector<16x32xf32>
    %144 = vector.extract_strided_slice %141 {offsets = [0, 64], sizes = [16, 32], strides = [1, 1]} : vector<16x128xf32> to vector<16x32xf32>
    %145 = vector.extract_strided_slice %140 {offsets = [0, 96], sizes = [16, 32], strides = [1, 1]} : vector<16x128xf32> to vector<16x32xf32>
    %146 = arith.mulf %143, %111 : vector<16x32xf32>
    %147 = arith.mulf %142, %144 : vector<16x32xf32>
    %148 = arith.addf %146, %147 : vector<16x32xf32>
    %149 = math.tanh %148 : vector<16x32xf32>
    %150 = arith.mulf %145, %149 : vector<16x32xf32>
    %151 = vector.extract_strided_slice %150 {offsets = [0, 0], sizes = [8, 32], strides = [1, 1]} : vector<16x32xf32> to vector<8x32xf32>
    %152 = arith.index_cast %121 : i32 to index
    %c0_47 = arith.constant 0 : index
    %153 = vector.load %arg11[%152, %c0_47] : memref<64x64xf32, #tpu.memory_space<vmem>>, vector<8x32xf32>
    tpu.vector_store %arg11[%152, %c0_47], %151 {strides = array<i32>} : memref<64x64xf32, #tpu.memory_space<vmem>>, vector<8x32xf32>,
    %154 = vector.extract_strided_slice %150 {offsets = [8, 0], sizes = [8, 32], strides = [1, 1]} : vector<16x32xf32> to vector<8x32xf32>
    %155 = arith.index_cast %124 : i32 to index
    %c32_48 = arith.constant 32 : index
    %156 = vector.load %arg11[%155, %c32_48] : memref<64x64xf32, #tpu.memory_space<vmem>>, vector<8x32xf32>
    tpu.vector_store %arg11[%155, %c32_48], %154 {strides = array<i32>} : memref<64x64xf32, #tpu.memory_space<vmem>>, vector<8x32xf32>,
    %c4_i32 = arith.constant 4 : i32
    %c8_i32_49 = arith.constant 8 : i32
    %157 = arith.muli %c4_i32, %c8_i32_49 : i32
    %158 = tpu.assume_multiple %157, 8 : i32
    %c7_i32_50 = arith.constant 7 : i32
    %159 = arith.subi %c7_i32_50, %c4_i32 : i32
    %c8_i32_51 = arith.constant 8 : i32
    %160 = arith.muli %159, %c8_i32_51 : i32
    %161 = tpu.assume_multiple %160, 8 : i32
    %c0_52 = arith.constant 0 : index
    %c0_53 = arith.constant 0 : index
    %162 = vector.load %arg3[%c0_52, %c0_53] : memref<32x256xf32, #tpu.memory_space<vmem>>, vector<32x256xf32>
    %cst_54 = arith.constant dense<0.000000e+00> : vector<16x256xf32>
    %163 = tpu.matmul %150, %162, %cst_54 {dimension_numbers = #tpu.dot_dimension_numbers<[1], [0], [0], [1], [0, 0, 1, 1], [], []>} : vector<16x32xf32>, vector<32x256xf32>, vector<16x256xf32> -> vector<16x256xf32>
    %164 = arith.index_cast %158 : i32 to index
    %c0_55 = arith.constant 0 : index
    %165 = vector.load %arg10[%164, %c0_55] : memref<64x256xf32, #tpu.memory_space<vmem>>, vector<8x128xf32>
    %166 = vector.extract_strided_slice %163 {offsets = [0, 0], sizes = [8, 128], strides = [1, 1]} : vector<16x256xf32> to vector<8x128xf32>
    %167 = arith.addf %165, %166 : vector<8x128xf32>
    %168 = arith.index_cast %161 : i32 to index
    %c128_56 = arith.constant 128 : index
    %169 = vector.load %arg10[%168, %c128_56] : memref<64x256xf32, #tpu.memory_space<vmem>>, vector<8x128xf32>
    %170 = vector.extract_strided_slice %163 {offsets = [8, 128], sizes = [8, 128], strides = [1, 1]} : vector<16x256xf32> to vector<8x128xf32>
    %171 = arith.addf %169, %170 : vector<8x128xf32>
    %172 = tpu.concatenate %167, %171 in 0 : vector<8x128xf32>, vector<8x128xf32> -> vector<16x128xf32>
    %173 = arith.negf %172 : vector<16x128xf32>
    %174 = math.exp %173 : vector<16x128xf32>
    %cst_57 = arith.constant 1.000000e+00 : f32
    %175 = vector.broadcast %cst_57 : f32 to vector<16x128xf32>
    %176 = arith.addf %175, %174 : vector<16x128xf32>
    %177 = arith.divf %175, %176 : vector<16x128xf32>
    %178 = math.tanh %172 : vector<16x128xf32>
    %179 = vector.extract_strided_slice %177 {offsets = [0, 0], sizes = [16, 32], strides = [1, 1]} : vector<16x128xf32> to vector<16x32xf32>
    %180 = vector.extract_strided_slice %177 {offsets = [0, 32], sizes = [16, 32], strides = [1, 1]} : vector<16x128xf32> to vector<16x32xf32>
    %181 = vector.extract_strided_slice %178 {offsets = [0, 64], sizes = [16, 32], strides = [1, 1]} : vector<16x128xf32> to vector<16x32xf32>
    %182 = vector.extract_strided_slice %177 {offsets = [0, 96], sizes = [16, 32], strides = [1, 1]} : vector<16x128xf32> to vector<16x32xf32>
    %183 = arith.mulf %180, %148 : vector<16x32xf32>
    %184 = arith.mulf %179, %181 : vector<16x32xf32>
    %185 = arith.addf %183, %184 : vector<16x32xf32>
    %186 = math.tanh %185 : vector<16x32xf32>
    %187 = arith.mulf %182, %186 : vector<16x32xf32>
    %188 = vector.extract_strided_slice %187 {offsets = [0, 0], sizes = [8, 32], strides = [1, 1]} : vector<16x32xf32> to vector<8x32xf32>
    %189 = arith.index_cast %158 : i32 to index
    %c0_58 = arith.constant 0 : index
    %190 = vector.load %arg11[%189, %c0_58] : memref<64x64xf32, #tpu.memory_space<vmem>>, vector<8x32xf32>
    tpu.vector_store %arg11[%189, %c0_58], %188 {strides = array<i32>} : memref<64x64xf32, #tpu.memory_space<vmem>>, vector<8x32xf32>,
    %191 = vector.extract_strided_slice %187 {offsets = [8, 0], sizes = [8, 32], strides = [1, 1]} : vector<16x32xf32> to vector<8x32xf32>
    %192 = arith.index_cast %161 : i32 to index
    %c32_59 = arith.constant 32 : index
    %193 = vector.load %arg11[%192, %c32_59] : memref<64x64xf32, #tpu.memory_space<vmem>>, vector<8x32xf32>
    tpu.vector_store %arg11[%192, %c32_59], %191 {strides = array<i32>} : memref<64x64xf32, #tpu.memory_space<vmem>>, vector<8x32xf32>,
    %c5_i32 = arith.constant 5 : i32
    %c8_i32_60 = arith.constant 8 : i32
    %194 = arith.muli %c5_i32, %c8_i32_60 : i32
    %195 = tpu.assume_multiple %194, 8 : i32
    %c7_i32_61 = arith.constant 7 : i32
    %196 = arith.subi %c7_i32_61, %c5_i32 : i32
    %c8_i32_62 = arith.constant 8 : i32
    %197 = arith.muli %196, %c8_i32_62 : i32
    %198 = tpu.assume_multiple %197, 8 : i32
    %c0_63 = arith.constant 0 : index
    %c0_64 = arith.constant 0 : index
    %199 = vector.load %arg3[%c0_63, %c0_64] : memref<32x256xf32, #tpu.memory_space<vmem>>, vector<32x256xf32>
    %cst_65 = arith.constant dense<0.000000e+00> : vector<16x256xf32>
    %200 = tpu.matmul %187, %199, %cst_65 {dimension_numbers = #tpu.dot_dimension_numbers<[1], [0], [0], [1], [0, 0, 1, 1], [], []>} : vector<16x32xf32>, vector<32x256xf32>, vector<16x256xf32> -> vector<16x256xf32>
    %201 = arith.index_cast %195 : i32 to index
    %c0_66 = arith.constant 0 : index
    %202 = vector.load %arg10[%201, %c0_66] : memref<64x256xf32, #tpu.memory_space<vmem>>, vector<8x128xf32>
    %203 = vector.extract_strided_slice %200 {offsets = [0, 0], sizes = [8, 128], strides = [1, 1]} : vector<16x256xf32> to vector<8x128xf32>
    %204 = arith.addf %202, %203 : vector<8x128xf32>
    %205 = arith.index_cast %198 : i32 to index
    %c128_67 = arith.constant 128 : index
    %206 = vector.load %arg10[%205, %c128_67] : memref<64x256xf32, #tpu.memory_space<vmem>>, vector<8x128xf32>
    %207 = vector.extract_strided_slice %200 {offsets = [8, 128], sizes = [8, 128], strides = [1, 1]} : vector<16x256xf32> to vector<8x128xf32>
    %208 = arith.addf %206, %207 : vector<8x128xf32>
    %209 = tpu.concatenate %204, %208 in 0 : vector<8x128xf32>, vector<8x128xf32> -> vector<16x128xf32>
    %210 = arith.negf %209 : vector<16x128xf32>
    %211 = math.exp %210 : vector<16x128xf32>
    %cst_68 = arith.constant 1.000000e+00 : f32
    %212 = vector.broadcast %cst_68 : f32 to vector<16x128xf32>
    %213 = arith.addf %212, %211 : vector<16x128xf32>
    %214 = arith.divf %212, %213 : vector<16x128xf32>
    %215 = math.tanh %209 : vector<16x128xf32>
    %216 = vector.extract_strided_slice %214 {offsets = [0, 0], sizes = [16, 32], strides = [1, 1]} : vector<16x128xf32> to vector<16x32xf32>
    %217 = vector.extract_strided_slice %214 {offsets = [0, 32], sizes = [16, 32], strides = [1, 1]} : vector<16x128xf32> to vector<16x32xf32>
    %218 = vector.extract_strided_slice %215 {offsets = [0, 64], sizes = [16, 32], strides = [1, 1]} : vector<16x128xf32> to vector<16x32xf32>
    %219 = vector.extract_strided_slice %214 {offsets = [0, 96], sizes = [16, 32], strides = [1, 1]} : vector<16x128xf32> to vector<16x32xf32>
    %220 = arith.mulf %217, %185 : vector<16x32xf32>
    %221 = arith.mulf %216, %218 : vector<16x32xf32>
    %222 = arith.addf %220, %221 : vector<16x32xf32>
    %223 = math.tanh %222 : vector<16x32xf32>
    %224 = arith.mulf %219, %223 : vector<16x32xf32>
    %225 = vector.extract_strided_slice %224 {offsets = [0, 0], sizes = [8, 32], strides = [1, 1]} : vector<16x32xf32> to vector<8x32xf32>
    %226 = arith.index_cast %195 : i32 to index
    %c0_69 = arith.constant 0 : index
    %227 = vector.load %arg11[%226, %c0_69] : memref<64x64xf32, #tpu.memory_space<vmem>>, vector<8x32xf32>
    tpu.vector_store %arg11[%226, %c0_69], %225 {strides = array<i32>} : memref<64x64xf32, #tpu.memory_space<vmem>>, vector<8x32xf32>,
    %228 = vector.extract_strided_slice %224 {offsets = [8, 0], sizes = [8, 32], strides = [1, 1]} : vector<16x32xf32> to vector<8x32xf32>
    %229 = arith.index_cast %198 : i32 to index
    %c32_70 = arith.constant 32 : index
    %230 = vector.load %arg11[%229, %c32_70] : memref<64x64xf32, #tpu.memory_space<vmem>>, vector<8x32xf32>
    tpu.vector_store %arg11[%229, %c32_70], %228 {strides = array<i32>} : memref<64x64xf32, #tpu.memory_space<vmem>>, vector<8x32xf32>,
    %c6_i32 = arith.constant 6 : i32
    %c8_i32_71 = arith.constant 8 : i32
    %231 = arith.muli %c6_i32, %c8_i32_71 : i32
    %232 = tpu.assume_multiple %231, 8 : i32
    %c7_i32_72 = arith.constant 7 : i32
    %233 = arith.subi %c7_i32_72, %c6_i32 : i32
    %c8_i32_73 = arith.constant 8 : i32
    %234 = arith.muli %233, %c8_i32_73 : i32
    %235 = tpu.assume_multiple %234, 8 : i32
    %c0_74 = arith.constant 0 : index
    %c0_75 = arith.constant 0 : index
    %236 = vector.load %arg3[%c0_74, %c0_75] : memref<32x256xf32, #tpu.memory_space<vmem>>, vector<32x256xf32>
    %cst_76 = arith.constant dense<0.000000e+00> : vector<16x256xf32>
    %237 = tpu.matmul %224, %236, %cst_76 {dimension_numbers = #tpu.dot_dimension_numbers<[1], [0], [0], [1], [0, 0, 1, 1], [], []>} : vector<16x32xf32>, vector<32x256xf32>, vector<16x256xf32> -> vector<16x256xf32>
    %238 = arith.index_cast %232 : i32 to index
    %c0_77 = arith.constant 0 : index
    %239 = vector.load %arg10[%238, %c0_77] : memref<64x256xf32, #tpu.memory_space<vmem>>, vector<8x128xf32>
    %240 = vector.extract_strided_slice %237 {offsets = [0, 0], sizes = [8, 128], strides = [1, 1]} : vector<16x256xf32> to vector<8x128xf32>
    %241 = arith.addf %239, %240 : vector<8x128xf32>
    %242 = arith.index_cast %235 : i32 to index
    %c128_78 = arith.constant 128 : index
    %243 = vector.load %arg10[%242, %c128_78] : memref<64x256xf32, #tpu.memory_space<vmem>>, vector<8x128xf32>
    %244 = vector.extract_strided_slice %237 {offsets = [8, 128], sizes = [8, 128], strides = [1, 1]} : vector<16x256xf32> to vector<8x128xf32>
    %245 = arith.addf %243, %244 : vector<8x128xf32>
    %246 = tpu.concatenate %241, %245 in 0 : vector<8x128xf32>, vector<8x128xf32> -> vector<16x128xf32>
    %247 = arith.negf %246 : vector<16x128xf32>
    %248 = math.exp %247 : vector<16x128xf32>
    %cst_79 = arith.constant 1.000000e+00 : f32
    %249 = vector.broadcast %cst_79 : f32 to vector<16x128xf32>
    %250 = arith.addf %249, %248 : vector<16x128xf32>
    %251 = arith.divf %249, %250 : vector<16x128xf32>
    %252 = math.tanh %246 : vector<16x128xf32>
    %253 = vector.extract_strided_slice %251 {offsets = [0, 0], sizes = [16, 32], strides = [1, 1]} : vector<16x128xf32> to vector<16x32xf32>
    %254 = vector.extract_strided_slice %251 {offsets = [0, 32], sizes = [16, 32], strides = [1, 1]} : vector<16x128xf32> to vector<16x32xf32>
    %255 = vector.extract_strided_slice %252 {offsets = [0, 64], sizes = [16, 32], strides = [1, 1]} : vector<16x128xf32> to vector<16x32xf32>
    %256 = vector.extract_strided_slice %251 {offsets = [0, 96], sizes = [16, 32], strides = [1, 1]} : vector<16x128xf32> to vector<16x32xf32>
    %257 = arith.mulf %254, %222 : vector<16x32xf32>
    %258 = arith.mulf %253, %255 : vector<16x32xf32>
    %259 = arith.addf %257, %258 : vector<16x32xf32>
    %260 = math.tanh %259 : vector<16x32xf32>
    %261 = arith.mulf %256, %260 : vector<16x32xf32>
    %262 = vector.extract_strided_slice %261 {offsets = [0, 0], sizes = [8, 32], strides = [1, 1]} : vector<16x32xf32> to vector<8x32xf32>
    %263 = arith.index_cast %232 : i32 to index
    %c0_80 = arith.constant 0 : index
    %264 = vector.load %arg11[%263, %c0_80] : memref<64x64xf32, #tpu.memory_space<vmem>>, vector<8x32xf32>
    tpu.vector_store %arg11[%263, %c0_80], %262 {strides = array<i32>} : memref<64x64xf32, #tpu.memory_space<vmem>>, vector<8x32xf32>,
    %265 = vector.extract_strided_slice %261 {offsets = [8, 0], sizes = [8, 32], strides = [1, 1]} : vector<16x32xf32> to vector<8x32xf32>
    %266 = arith.index_cast %235 : i32 to index
    %c32_81 = arith.constant 32 : index
    %267 = vector.load %arg11[%266, %c32_81] : memref<64x64xf32, #tpu.memory_space<vmem>>, vector<8x32xf32>
    tpu.vector_store %arg11[%266, %c32_81], %265 {strides = array<i32>} : memref<64x64xf32, #tpu.memory_space<vmem>>, vector<8x32xf32>,
    %c7_i32_82 = arith.constant 7 : i32
    %c8_i32_83 = arith.constant 8 : i32
    %268 = arith.muli %c7_i32_82, %c8_i32_83 : i32
    %269 = tpu.assume_multiple %268, 8 : i32
    %c7_i32_84 = arith.constant 7 : i32
    %270 = arith.subi %c7_i32_84, %c7_i32_82 : i32
    %c8_i32_85 = arith.constant 8 : i32
    %271 = arith.muli %270, %c8_i32_85 : i32
    %272 = tpu.assume_multiple %271, 8 : i32
    %c0_86 = arith.constant 0 : index
    %c0_87 = arith.constant 0 : index
    %273 = vector.load %arg3[%c0_86, %c0_87] : memref<32x256xf32, #tpu.memory_space<vmem>>, vector<32x256xf32>
    %cst_88 = arith.constant dense<0.000000e+00> : vector<16x256xf32>
    %274 = tpu.matmul %261, %273, %cst_88 {dimension_numbers = #tpu.dot_dimension_numbers<[1], [0], [0], [1], [0, 0, 1, 1], [], []>} : vector<16x32xf32>, vector<32x256xf32>, vector<16x256xf32> -> vector<16x256xf32>
    %275 = arith.index_cast %269 : i32 to index
    %c0_89 = arith.constant 0 : index
    %276 = vector.load %arg10[%275, %c0_89] : memref<64x256xf32, #tpu.memory_space<vmem>>, vector<8x128xf32>
    %277 = vector.extract_strided_slice %274 {offsets = [0, 0], sizes = [8, 128], strides = [1, 1]} : vector<16x256xf32> to vector<8x128xf32>
    %278 = arith.addf %276, %277 : vector<8x128xf32>
    %279 = arith.index_cast %272 : i32 to index
    %c128_90 = arith.constant 128 : index
    %280 = vector.load %arg10[%279, %c128_90] : memref<64x256xf32, #tpu.memory_space<vmem>>, vector<8x128xf32>
    %281 = vector.extract_strided_slice %274 {offsets = [8, 128], sizes = [8, 128], strides = [1, 1]} : vector<16x256xf32> to vector<8x128xf32>
    %282 = arith.addf %280, %281 : vector<8x128xf32>
    %283 = tpu.concatenate %278, %282 in 0 : vector<8x128xf32>, vector<8x128xf32> -> vector<16x128xf32>
    %284 = arith.negf %283 : vector<16x128xf32>
    %285 = math.exp %284 : vector<16x128xf32>
    %cst_91 = arith.constant 1.000000e+00 : f32
    %286 = vector.broadcast %cst_91 : f32 to vector<16x128xf32>
    %287 = arith.addf %286, %285 : vector<16x128xf32>
    %288 = arith.divf %286, %287 : vector<16x128xf32>
    %289 = math.tanh %283 : vector<16x128xf32>
    %290 = vector.extract_strided_slice %288 {offsets = [0, 0], sizes = [16, 32], strides = [1, 1]} : vector<16x128xf32> to vector<16x32xf32>
    %291 = vector.extract_strided_slice %288 {offsets = [0, 32], sizes = [16, 32], strides = [1, 1]} : vector<16x128xf32> to vector<16x32xf32>
    %292 = vector.extract_strided_slice %289 {offsets = [0, 64], sizes = [16, 32], strides = [1, 1]} : vector<16x128xf32> to vector<16x32xf32>
    %293 = vector.extract_strided_slice %288 {offsets = [0, 96], sizes = [16, 32], strides = [1, 1]} : vector<16x128xf32> to vector<16x32xf32>
    %294 = arith.mulf %291, %259 : vector<16x32xf32>
    %295 = arith.mulf %290, %292 : vector<16x32xf32>
    %296 = arith.addf %294, %295 : vector<16x32xf32>
    %297 = math.tanh %296 : vector<16x32xf32>
    %298 = arith.mulf %293, %297 : vector<16x32xf32>
    %299 = vector.extract_strided_slice %298 {offsets = [0, 0], sizes = [8, 32], strides = [1, 1]} : vector<16x32xf32> to vector<8x32xf32>
    %300 = arith.index_cast %269 : i32 to index
    %c0_92 = arith.constant 0 : index
    %301 = vector.load %arg11[%300, %c0_92] : memref<64x64xf32, #tpu.memory_space<vmem>>, vector<8x32xf32>
    tpu.vector_store %arg11[%300, %c0_92], %299 {strides = array<i32>} : memref<64x64xf32, #tpu.memory_space<vmem>>, vector<8x32xf32>,
    %302 = vector.extract_strided_slice %298 {offsets = [8, 0], sizes = [8, 32], strides = [1, 1]} : vector<16x32xf32> to vector<8x32xf32>
    %303 = arith.index_cast %272 : i32 to index
    %c32_93 = arith.constant 32 : index
    %304 = vector.load %arg11[%303, %c32_93] : memref<64x64xf32, #tpu.memory_space<vmem>>, vector<8x32xf32>
    tpu.vector_store %arg11[%303, %c32_93], %302 {strides = array<i32>} : memref<64x64xf32, #tpu.memory_space<vmem>>, vector<8x32xf32>,
    %c8_i32_94 = arith.constant 8 : i32
    %c0_95 = arith.constant 0 : index
    %c0_96 = arith.constant 0 : index
    %305 = vector.load %arg11[%c0_95, %c0_96] : memref<64x64xf32, #tpu.memory_space<vmem>>, vector<64x64xf32>
    %c0_97 = arith.constant 0 : index
    %c0_98 = arith.constant 0 : index
    %306 = vector.load %arg4[%c0_97, %c0_98] : memref<64x128xf32, #tpu.memory_space<vmem>>, vector<64x128xf32>
    %cst_99 = arith.constant dense<0.000000e+00> : vector<64x128xf32>
    %307 = tpu.matmul %305, %306, %cst_99 {dimension_numbers = #tpu.dot_dimension_numbers<[1], [0], [0], [1], [0, 0, 1, 1], [], []>} : vector<64x64xf32>, vector<64x128xf32>, vector<64x128xf32> -> vector<64x128xf32>
    %c0_100 = arith.constant 0 : index
    %c0_101 = arith.constant 0 : index
    %308 = vector.load %arg5[%c0_100, %c0_101] : memref<1x128xf32, #tpu.memory_space<vmem>>, vector<1x128xf32>
    %309 = vector.broadcast %308 : vector<1x128xf32> to vector<64x128xf32>
    %310 = arith.addf %307, %309 : vector<64x128xf32>
    %c0_102 = arith.constant 0 : index
    %c0_103 = arith.constant 0 : index
    %311 = vector.load %arg10[%c0_102, %c0_103] : memref<64x256xf32, #tpu.memory_space<vmem>>, vector<64x128xf32>
    tpu.vector_store %arg10[%c0_102, %c0_103], %310 {strides = array<i32>} : memref<64x256xf32, #tpu.memory_space<vmem>>, vector<64x128xf32>,
    %c0_i32_104 = arith.constant 0 : i32
    %c8_i32_105 = arith.constant 8 : i32
    %312 = arith.muli %c0_i32_104, %c8_i32_105 : i32
    %313 = tpu.assume_multiple %312, 8 : i32
    %314 = arith.index_cast %313 : i32 to index
    %c0_106 = arith.constant 0 : index
    %315 = vector.load %arg10[%314, %c0_106] : memref<64x256xf32, #tpu.memory_space<vmem>>, vector<8x128xf32>
    %c0_107 = arith.constant 0 : index
    %c0_108 = arith.constant 0 : index
    %316 = vector.load %arg8[%c0_107, %c0_108] : memref<32x128xf32, #tpu.memory_space<vmem>>, vector<32x128xf32>
    %cst_109 = arith.constant dense<0.000000e+00> : vector<8x128xf32>
    %317 = tpu.matmul %7, %316, %cst_109 {dimension_numbers = #tpu.dot_dimension_numbers<[1], [0], [0], [1], [0, 0, 1, 1], [], []>} : vector<8x32xf32>, vector<32x128xf32>, vector<8x128xf32> -> vector<8x128xf32>
    %318 = arith.addf %315, %317 : vector<8x128xf32>
    %319 = arith.negf %318 : vector<8x128xf32>
    %320 = math.exp %319 : vector<8x128xf32>
    %cst_110 = arith.constant 1.000000e+00 : f32
    %321 = vector.broadcast %cst_110 : f32 to vector<8x128xf32>
    %322 = arith.addf %321, %320 : vector<8x128xf32>
    %323 = arith.divf %321, %322 : vector<8x128xf32>
    %324 = math.tanh %318 : vector<8x128xf32>
    %325 = vector.extract_strided_slice %323 {offsets = [0, 0], sizes = [8, 32], strides = [1, 1]} : vector<8x128xf32> to vector<8x32xf32>
    %326 = vector.extract_strided_slice %323 {offsets = [0, 32], sizes = [8, 32], strides = [1, 1]} : vector<8x128xf32> to vector<8x32xf32>
    %327 = vector.extract_strided_slice %324 {offsets = [0, 64], sizes = [8, 32], strides = [1, 1]} : vector<8x128xf32> to vector<8x32xf32>
    %328 = vector.extract_strided_slice %323 {offsets = [0, 96], sizes = [8, 32], strides = [1, 1]} : vector<8x128xf32> to vector<8x32xf32>
    %329 = arith.mulf %326, %7 : vector<8x32xf32>
    %330 = arith.mulf %325, %327 : vector<8x32xf32>
    %331 = arith.addf %329, %330 : vector<8x32xf32>
    %332 = math.tanh %331 : vector<8x32xf32>
    %333 = arith.mulf %328, %332 : vector<8x32xf32>
    %c1_i32_111 = arith.constant 1 : i32
    %c8_i32_112 = arith.constant 8 : i32
    %334 = arith.muli %c1_i32_111, %c8_i32_112 : i32
    %335 = tpu.assume_multiple %334, 8 : i32
    %336 = arith.index_cast %335 : i32 to index
    %c0_113 = arith.constant 0 : index
    %337 = vector.load %arg10[%336, %c0_113] : memref<64x256xf32, #tpu.memory_space<vmem>>, vector<8x128xf32>
    %c0_114 = arith.constant 0 : index
    %c0_115 = arith.constant 0 : index
    %338 = vector.load %arg8[%c0_114, %c0_115] : memref<32x128xf32, #tpu.memory_space<vmem>>, vector<32x128xf32>
    %cst_116 = arith.constant dense<0.000000e+00> : vector<8x128xf32>
    %339 = tpu.matmul %333, %338, %cst_116 {dimension_numbers = #tpu.dot_dimension_numbers<[1], [0], [0], [1], [0, 0, 1, 1], [], []>} : vector<8x32xf32>, vector<32x128xf32>, vector<8x128xf32> -> vector<8x128xf32>
    %340 = arith.addf %337, %339 : vector<8x128xf32>
    %341 = arith.negf %340 : vector<8x128xf32>
    %342 = math.exp %341 : vector<8x128xf32>
    %cst_117 = arith.constant 1.000000e+00 : f32
    %343 = vector.broadcast %cst_117 : f32 to vector<8x128xf32>
    %344 = arith.addf %343, %342 : vector<8x128xf32>
    %345 = arith.divf %343, %344 : vector<8x128xf32>
    %346 = math.tanh %340 : vector<8x128xf32>
    %347 = vector.extract_strided_slice %345 {offsets = [0, 0], sizes = [8, 32], strides = [1, 1]} : vector<8x128xf32> to vector<8x32xf32>
    %348 = vector.extract_strided_slice %345 {offsets = [0, 32], sizes = [8, 32], strides = [1, 1]} : vector<8x128xf32> to vector<8x32xf32>
    %349 = vector.extract_strided_slice %346 {offsets = [0, 64], sizes = [8, 32], strides = [1, 1]} : vector<8x128xf32> to vector<8x32xf32>
    %350 = vector.extract_strided_slice %345 {offsets = [0, 96], sizes = [8, 32], strides = [1, 1]} : vector<8x128xf32> to vector<8x32xf32>
    %351 = arith.mulf %348, %331 : vector<8x32xf32>
    %352 = arith.mulf %347, %349 : vector<8x32xf32>
    %353 = arith.addf %351, %352 : vector<8x32xf32>
    %354 = math.tanh %353 : vector<8x32xf32>
    %355 = arith.mulf %350, %354 : vector<8x32xf32>
    %c2_i32_118 = arith.constant 2 : i32
    %c8_i32_119 = arith.constant 8 : i32
    %356 = arith.muli %c2_i32_118, %c8_i32_119 : i32
    %357 = tpu.assume_multiple %356, 8 : i32
    %358 = arith.index_cast %357 : i32 to index
    %c0_120 = arith.constant 0 : index
    %359 = vector.load %arg10[%358, %c0_120] : memref<64x256xf32, #tpu.memory_space<vmem>>, vector<8x128xf32>
    %c0_121 = arith.constant 0 : index
    %c0_122 = arith.constant 0 : index
    %360 = vector.load %arg8[%c0_121, %c0_122] : memref<32x128xf32, #tpu.memory_space<vmem>>, vector<32x128xf32>
    %cst_123 = arith.constant dense<0.000000e+00> : vector<8x128xf32>
    %361 = tpu.matmul %355, %360, %cst_123 {dimension_numbers = #tpu.dot_dimension_numbers<[1], [0], [0], [1], [0, 0, 1, 1], [], []>} : vector<8x32xf32>, vector<32x128xf32>, vector<8x128xf32> -> vector<8x128xf32>
    %362 = arith.addf %359, %361 : vector<8x128xf32>
    %363 = arith.negf %362 : vector<8x128xf32>
    %364 = math.exp %363 : vector<8x128xf32>
    %cst_124 = arith.constant 1.000000e+00 : f32
    %365 = vector.broadcast %cst_124 : f32 to vector<8x128xf32>
    %366 = arith.addf %365, %364 : vector<8x128xf32>
    %367 = arith.divf %365, %366 : vector<8x128xf32>
    %368 = math.tanh %362 : vector<8x128xf32>
    %369 = vector.extract_strided_slice %367 {offsets = [0, 0], sizes = [8, 32], strides = [1, 1]} : vector<8x128xf32> to vector<8x32xf32>
    %370 = vector.extract_strided_slice %367 {offsets = [0, 32], sizes = [8, 32], strides = [1, 1]} : vector<8x128xf32> to vector<8x32xf32>
    %371 = vector.extract_strided_slice %368 {offsets = [0, 64], sizes = [8, 32], strides = [1, 1]} : vector<8x128xf32> to vector<8x32xf32>
    %372 = vector.extract_strided_slice %367 {offsets = [0, 96], sizes = [8, 32], strides = [1, 1]} : vector<8x128xf32> to vector<8x32xf32>
    %373 = arith.mulf %370, %353 : vector<8x32xf32>
    %374 = arith.mulf %369, %371 : vector<8x32xf32>
    %375 = arith.addf %373, %374 : vector<8x32xf32>
    %376 = math.tanh %375 : vector<8x32xf32>
    %377 = arith.mulf %372, %376 : vector<8x32xf32>
    %c3_i32_125 = arith.constant 3 : i32
    %c8_i32_126 = arith.constant 8 : i32
    %378 = arith.muli %c3_i32_125, %c8_i32_126 : i32
    %379 = tpu.assume_multiple %378, 8 : i32
    %380 = arith.index_cast %379 : i32 to index
    %c0_127 = arith.constant 0 : index
    %381 = vector.load %arg10[%380, %c0_127] : memref<64x256xf32, #tpu.memory_space<vmem>>, vector<8x128xf32>
    %c0_128 = arith.constant 0 : index
    %c0_129 = arith.constant 0 : index
    %382 = vector.load %arg8[%c0_128, %c0_129] : memref<32x128xf32, #tpu.memory_space<vmem>>, vector<32x128xf32>
    %cst_130 = arith.constant dense<0.000000e+00> : vector<8x128xf32>
    %383 = tpu.matmul %377, %382, %cst_130 {dimension_numbers = #tpu.dot_dimension_numbers<[1], [0], [0], [1], [0, 0, 1, 1], [], []>} : vector<8x32xf32>, vector<32x128xf32>, vector<8x128xf32> -> vector<8x128xf32>
    %384 = arith.addf %381, %383 : vector<8x128xf32>
    %385 = arith.negf %384 : vector<8x128xf32>
    %386 = math.exp %385 : vector<8x128xf32>
    %cst_131 = arith.constant 1.000000e+00 : f32
    %387 = vector.broadcast %cst_131 : f32 to vector<8x128xf32>
    %388 = arith.addf %387, %386 : vector<8x128xf32>
    %389 = arith.divf %387, %388 : vector<8x128xf32>
    %390 = math.tanh %384 : vector<8x128xf32>
    %391 = vector.extract_strided_slice %389 {offsets = [0, 0], sizes = [8, 32], strides = [1, 1]} : vector<8x128xf32> to vector<8x32xf32>
    %392 = vector.extract_strided_slice %389 {offsets = [0, 32], sizes = [8, 32], strides = [1, 1]} : vector<8x128xf32> to vector<8x32xf32>
    %393 = vector.extract_strided_slice %390 {offsets = [0, 64], sizes = [8, 32], strides = [1, 1]} : vector<8x128xf32> to vector<8x32xf32>
    %394 = vector.extract_strided_slice %389 {offsets = [0, 96], sizes = [8, 32], strides = [1, 1]} : vector<8x128xf32> to vector<8x32xf32>
    %395 = arith.mulf %392, %375 : vector<8x32xf32>
    %396 = arith.mulf %391, %393 : vector<8x32xf32>
    %397 = arith.addf %395, %396 : vector<8x32xf32>
    %398 = math.tanh %397 : vector<8x32xf32>
    %399 = arith.mulf %394, %398 : vector<8x32xf32>
    %c4_i32_132 = arith.constant 4 : i32
    %c8_i32_133 = arith.constant 8 : i32
    %400 = arith.muli %c4_i32_132, %c8_i32_133 : i32
    %401 = tpu.assume_multiple %400, 8 : i32
    %402 = arith.index_cast %401 : i32 to index
    %c0_134 = arith.constant 0 : index
    %403 = vector.load %arg10[%402, %c0_134] : memref<64x256xf32, #tpu.memory_space<vmem>>, vector<8x128xf32>
    %c0_135 = arith.constant 0 : index
    %c0_136 = arith.constant 0 : index
    %404 = vector.load %arg8[%c0_135, %c0_136] : memref<32x128xf32, #tpu.memory_space<vmem>>, vector<32x128xf32>
    %cst_137 = arith.constant dense<0.000000e+00> : vector<8x128xf32>
    %405 = tpu.matmul %399, %404, %cst_137 {dimension_numbers = #tpu.dot_dimension_numbers<[1], [0], [0], [1], [0, 0, 1, 1], [], []>} : vector<8x32xf32>, vector<32x128xf32>, vector<8x128xf32> -> vector<8x128xf32>
    %406 = arith.addf %403, %405 : vector<8x128xf32>
    %407 = arith.negf %406 : vector<8x128xf32>
    %408 = math.exp %407 : vector<8x128xf32>
    %cst_138 = arith.constant 1.000000e+00 : f32
    %409 = vector.broadcast %cst_138 : f32 to vector<8x128xf32>
    %410 = arith.addf %409, %408 : vector<8x128xf32>
    %411 = arith.divf %409, %410 : vector<8x128xf32>
    %412 = math.tanh %406 : vector<8x128xf32>
    %413 = vector.extract_strided_slice %411 {offsets = [0, 0], sizes = [8, 32], strides = [1, 1]} : vector<8x128xf32> to vector<8x32xf32>
    %414 = vector.extract_strided_slice %411 {offsets = [0, 32], sizes = [8, 32], strides = [1, 1]} : vector<8x128xf32> to vector<8x32xf32>
    %415 = vector.extract_strided_slice %412 {offsets = [0, 64], sizes = [8, 32], strides = [1, 1]} : vector<8x128xf32> to vector<8x32xf32>
    %416 = vector.extract_strided_slice %411 {offsets = [0, 96], sizes = [8, 32], strides = [1, 1]} : vector<8x128xf32> to vector<8x32xf32>
    %417 = arith.mulf %414, %397 : vector<8x32xf32>
    %418 = arith.mulf %413, %415 : vector<8x32xf32>
    %419 = arith.addf %417, %418 : vector<8x32xf32>
    %420 = math.tanh %419 : vector<8x32xf32>
    %421 = arith.mulf %416, %420 : vector<8x32xf32>
    %c5_i32_139 = arith.constant 5 : i32
    %c8_i32_140 = arith.constant 8 : i32
    %422 = arith.muli %c5_i32_139, %c8_i32_140 : i32
    %423 = tpu.assume_multiple %422, 8 : i32
    %424 = arith.index_cast %423 : i32 to index
    %c0_141 = arith.constant 0 : index
    %425 = vector.load %arg10[%424, %c0_141] : memref<64x256xf32, #tpu.memory_space<vmem>>, vector<8x128xf32>
    %c0_142 = arith.constant 0 : index
    %c0_143 = arith.constant 0 : index
    %426 = vector.load %arg8[%c0_142, %c0_143] : memref<32x128xf32, #tpu.memory_space<vmem>>, vector<32x128xf32>
    %cst_144 = arith.constant dense<0.000000e+00> : vector<8x128xf32>
    %427 = tpu.matmul %421, %426, %cst_144 {dimension_numbers = #tpu.dot_dimension_numbers<[1], [0], [0], [1], [0, 0, 1, 1], [], []>} : vector<8x32xf32>, vector<32x128xf32>, vector<8x128xf32> -> vector<8x128xf32>
    %428 = arith.addf %425, %427 : vector<8x128xf32>
    %429 = arith.negf %428 : vector<8x128xf32>
    %430 = math.exp %429 : vector<8x128xf32>
    %cst_145 = arith.constant 1.000000e+00 : f32
    %431 = vector.broadcast %cst_145 : f32 to vector<8x128xf32>
    %432 = arith.addf %431, %430 : vector<8x128xf32>
    %433 = arith.divf %431, %432 : vector<8x128xf32>
    %434 = math.tanh %428 : vector<8x128xf32>
    %435 = vector.extract_strided_slice %433 {offsets = [0, 0], sizes = [8, 32], strides = [1, 1]} : vector<8x128xf32> to vector<8x32xf32>
    %436 = vector.extract_strided_slice %433 {offsets = [0, 32], sizes = [8, 32], strides = [1, 1]} : vector<8x128xf32> to vector<8x32xf32>
    %437 = vector.extract_strided_slice %434 {offsets = [0, 64], sizes = [8, 32], strides = [1, 1]} : vector<8x128xf32> to vector<8x32xf32>
    %438 = vector.extract_strided_slice %433 {offsets = [0, 96], sizes = [8, 32], strides = [1, 1]} : vector<8x128xf32> to vector<8x32xf32>
    %439 = arith.mulf %436, %419 : vector<8x32xf32>
    %440 = arith.mulf %435, %437 : vector<8x32xf32>
    %441 = arith.addf %439, %440 : vector<8x32xf32>
    %442 = math.tanh %441 : vector<8x32xf32>
    %443 = arith.mulf %438, %442 : vector<8x32xf32>
    %c6_i32_146 = arith.constant 6 : i32
    %c8_i32_147 = arith.constant 8 : i32
    %444 = arith.muli %c6_i32_146, %c8_i32_147 : i32
    %445 = tpu.assume_multiple %444, 8 : i32
    %446 = arith.index_cast %445 : i32 to index
    %c0_148 = arith.constant 0 : index
    %447 = vector.load %arg10[%446, %c0_148] : memref<64x256xf32, #tpu.memory_space<vmem>>, vector<8x128xf32>
    %c0_149 = arith.constant 0 : index
    %c0_150 = arith.constant 0 : index
    %448 = vector.load %arg8[%c0_149, %c0_150] : memref<32x128xf32, #tpu.memory_space<vmem>>, vector<32x128xf32>
    %cst_151 = arith.constant dense<0.000000e+00> : vector<8x128xf32>
    %449 = tpu.matmul %443, %448, %cst_151 {dimension_numbers = #tpu.dot_dimension_numbers<[1], [0], [0], [1], [0, 0, 1, 1], [], []>} : vector<8x32xf32>, vector<32x128xf32>, vector<8x128xf32> -> vector<8x128xf32>
    %450 = arith.addf %447, %449 : vector<8x128xf32>
    %451 = arith.negf %450 : vector<8x128xf32>
    %452 = math.exp %451 : vector<8x128xf32>
    %cst_152 = arith.constant 1.000000e+00 : f32
    %453 = vector.broadcast %cst_152 : f32 to vector<8x128xf32>
    %454 = arith.addf %453, %452 : vector<8x128xf32>
    %455 = arith.divf %453, %454 : vector<8x128xf32>
    %456 = math.tanh %450 : vector<8x128xf32>
    %457 = vector.extract_strided_slice %455 {offsets = [0, 0], sizes = [8, 32], strides = [1, 1]} : vector<8x128xf32> to vector<8x32xf32>
    %458 = vector.extract_strided_slice %455 {offsets = [0, 32], sizes = [8, 32], strides = [1, 1]} : vector<8x128xf32> to vector<8x32xf32>
    %459 = vector.extract_strided_slice %456 {offsets = [0, 64], sizes = [8, 32], strides = [1, 1]} : vector<8x128xf32> to vector<8x32xf32>
    %460 = vector.extract_strided_slice %455 {offsets = [0, 96], sizes = [8, 32], strides = [1, 1]} : vector<8x128xf32> to vector<8x32xf32>
    %461 = arith.mulf %458, %441 : vector<8x32xf32>
    %462 = arith.mulf %457, %459 : vector<8x32xf32>
    %463 = arith.addf %461, %462 : vector<8x32xf32>
    %464 = math.tanh %463 : vector<8x32xf32>
    %465 = arith.mulf %460, %464 : vector<8x32xf32>
    %c7_i32_153 = arith.constant 7 : i32
    %c8_i32_154 = arith.constant 8 : i32
    %466 = arith.muli %c7_i32_153, %c8_i32_154 : i32
    %467 = tpu.assume_multiple %466, 8 : i32
    %468 = arith.index_cast %467 : i32 to index
    %c0_155 = arith.constant 0 : index
    %469 = vector.load %arg10[%468, %c0_155] : memref<64x256xf32, #tpu.memory_space<vmem>>, vector<8x128xf32>
    %c0_156 = arith.constant 0 : index
    %c0_157 = arith.constant 0 : index
    %470 = vector.load %arg8[%c0_156, %c0_157] : memref<32x128xf32, #tpu.memory_space<vmem>>, vector<32x128xf32>
    %cst_158 = arith.constant dense<0.000000e+00> : vector<8x128xf32>
    %471 = tpu.matmul %465, %470, %cst_158 {dimension_numbers = #tpu.dot_dimension_numbers<[1], [0], [0], [1], [0, 0, 1, 1], [], []>} : vector<8x32xf32>, vector<32x128xf32>, vector<8x128xf32> -> vector<8x128xf32>
    %472 = arith.addf %469, %471 : vector<8x128xf32>
    %473 = arith.negf %472 : vector<8x128xf32>
    %474 = math.exp %473 : vector<8x128xf32>
    %cst_159 = arith.constant 1.000000e+00 : f32
    %475 = vector.broadcast %cst_159 : f32 to vector<8x128xf32>
    %476 = arith.addf %475, %474 : vector<8x128xf32>
    %477 = arith.divf %475, %476 : vector<8x128xf32>
    %478 = math.tanh %472 : vector<8x128xf32>
    %479 = vector.extract_strided_slice %477 {offsets = [0, 0], sizes = [8, 32], strides = [1, 1]} : vector<8x128xf32> to vector<8x32xf32>
    %480 = vector.extract_strided_slice %477 {offsets = [0, 32], sizes = [8, 32], strides = [1, 1]} : vector<8x128xf32> to vector<8x32xf32>
    %481 = vector.extract_strided_slice %478 {offsets = [0, 64], sizes = [8, 32], strides = [1, 1]} : vector<8x128xf32> to vector<8x32xf32>
    %482 = vector.extract_strided_slice %477 {offsets = [0, 96], sizes = [8, 32], strides = [1, 1]} : vector<8x128xf32> to vector<8x32xf32>
    %483 = arith.mulf %480, %463 : vector<8x32xf32>
    %484 = arith.mulf %479, %481 : vector<8x32xf32>
    %485 = arith.addf %483, %484 : vector<8x32xf32>
    %486 = math.tanh %485 : vector<8x32xf32>
    %487 = arith.mulf %482, %486 : vector<8x32xf32>
    %c8_i32_160 = arith.constant 8 : i32
    %c56_i32 = arith.constant 56 : i32
    %488 = tpu.assume_multiple %c56_i32, 8 : i32
    %489 = arith.index_cast %488 : i32 to index
    %c0_161 = arith.constant 0 : index
    %490 = vector.load %arg11[%489, %c0_161] : memref<64x64xf32, #tpu.memory_space<vmem>>, vector<8x64xf32>
    %c0_162 = arith.constant 0 : index
    %c0_163 = arith.constant 0 : index
    %491 = vector.load %arg6[%c0_162, %c0_163] : memref<64x128xf32, #tpu.memory_space<vmem>>, vector<64x128xf32>
    %cst_164 = arith.constant dense<0.000000e+00> : vector<8x128xf32>
    %492 = tpu.matmul %490, %491, %cst_164 {dimension_numbers = #tpu.dot_dimension_numbers<[1], [0], [0], [1], [0, 0, 1, 1], [], []>} : vector<8x64xf32>, vector<64x128xf32>, vector<8x128xf32> -> vector<8x128xf32>
    %c0_165 = arith.constant 0 : index
    %c0_166 = arith.constant 0 : index
    %493 = vector.load %arg7[%c0_165, %c0_166] : memref<1x128xf32, #tpu.memory_space<vmem>>, vector<1x128xf32>
    %494 = vector.broadcast %493 : vector<1x128xf32> to vector<8x128xf32>
    %495 = arith.addf %492, %494 : vector<8x128xf32>
    %496 = arith.negf %495 : vector<8x128xf32>
    %497 = math.exp %496 : vector<8x128xf32>
    %cst_167 = arith.constant 1.000000e+00 : f32
    %498 = vector.broadcast %cst_167 : f32 to vector<8x128xf32>
    %499 = arith.addf %498, %497 : vector<8x128xf32>
    %500 = arith.divf %498, %499 : vector<8x128xf32>
    %501 = math.tanh %495 : vector<8x128xf32>
    %502 = vector.extract_strided_slice %500 {offsets = [0, 0], sizes = [8, 32], strides = [1, 1]} : vector<8x128xf32> to vector<8x32xf32>
    %503 = vector.extract_strided_slice %501 {offsets = [0, 64], sizes = [8, 32], strides = [1, 1]} : vector<8x128xf32> to vector<8x32xf32>
    %504 = vector.extract_strided_slice %500 {offsets = [0, 96], sizes = [8, 32], strides = [1, 1]} : vector<8x128xf32> to vector<8x32xf32>
    %505 = arith.mulf %502, %503 : vector<8x32xf32>
    %506 = math.tanh %505 : vector<8x32xf32>
    %507 = arith.mulf %504, %506 : vector<8x32xf32>
    %508 = tpu.concatenate %487, %507 in 1 : vector<8x32xf32>, vector<8x32xf32> -> vector<8x64xf32>
    %c0_168 = arith.constant 0 : index
    %c0_169 = arith.constant 0 : index
    %509 = vector.load %arg9[%c0_168, %c0_169] : memref<8x64xf32, #tpu.memory_space<vmem>>, vector<8x64xf32>
    tpu.vector_store %arg9[%c0_168, %c0_169], %508 {strides = array<i32>} : memref<8x64xf32, #tpu.memory_space<vmem>>, vector<8x64xf32>,
    return
  }
}

</mosaic_0001>

<bundles_post_ra>
// kernel: bert_with_lstm_forward.1
= control target key start
LH: loop header
LB: loop body
LE: loop exit
PB: predicated region body
PF: predicated region fallthrough
CT: control target
= control target key end

     0   :  { %14 = vsyncpa [#allocation5], 0  ;;  %s3968_s0 = inlined_call_operand.vmem [shape: f32[64,32], index: 0, kind: input, shape index: {}]   ;;  %s3969_s1 = inlined_call_operand.vmem [shape: f32[32,256], index: 1, kind: input, shape index: {}]   ;;  %s3970_s2 = inlined_call_operand.vmem [shape: f32[1,256], index: 2, kind: input, shape index: {}]   ;;  %s3971_s3 = inlined_call_operand.vmem [shape: f32[32,256], index: 3, kind: input, shape index: {}]   ;;  %s3972_s4 = inlined_call_operand.hbm [shape: f32[64,128], index: 4, kind: input, shape index: {}]   ;;  %s3973_s5 = inlined_call_operand.hbm [shape: f32[1,128], index: 5, kind: input, shape index: {}]   ;;  %s3974_s6 = inlined_call_operand.hbm [shape: f32[64,128], index: 6, kind: input, shape index: {}]   ;;  %s3975_s7 = inlined_call_operand.hbm [shape: f32[1,128], index: 7, kind: input, shape index: {}]   ;;  %s3976_s8 = inlined_call_operand.hbm [shape: f32[32,128], index: 8, kind: input, shape index: {}]   ;;  %s3977_s9 = inlined_call_operand.vmem [shape: f32[8,64], index: 9, kind: output, shape index: {}]  }
   0x1   :  { %15 = vsyncpa [#allocation7], 0 }
   0x2   :  { %16 = vsyncpa [#allocation10], 0  ;;  %s3356_s30 = smov [#allocation6]   ;;  %s3357_s11 = smov [#allocation9]  }
   0x3   :  { %s43_s10 = sshll.u32 %s3356_s30, 4  ;;  %s65_s12 = sshll.u32 %s3357_s11, 4  ;;  %s44_s10 = int_to_ptr.vmem [resolvable:$true] %s43_s10  ;;  %s66_s12 = int_to_ptr.vmem [resolvable:$true] %s65_s12 }
   0x4   :  { %s3240_s15 = scalar_lea.hbm %s3973_s5, 16 }
   0x5   :  { %p3241_p0 = scmp.ne.s32.totalorder %s3973_s5, %s3240_s15  ;;  %p3244_p1 = scmp.lt.u32.totalorder %s3240_s15, %s3973_s5 }
   0x7   :  { %p3246_p2 = pnand %p3244_p1, %p3241_p0 }
   0x9   :  { %3249 = shalt.err (!%p3246_p2)
}
   0xa   :  { %s3250_s20 = scalar_lea.vmem %s44_s10, 16  ;;  %s3254_s21 = scalar_lea.vmem %s44_s10, 32 }
   0xb   :  { %p3251_p3 = scmp.ne.s32.totalorder %s44_s10, %s3250_s20  ;;  %p3255_p4 = scmp.lt.s32.totalorder %s44_s10, %s44_s10 }
   0xc   :  { %p3256_p5 = scmp.lt.s32.totalorder %s3254_s21, %s3250_s20 }
   0xe   :  { %p3257_p6 = por %p3256_p5, %p3255_p4 }
  0x10   :  { %p3258_p7 = pnand %p3257_p6, %p3251_p3 }
  0x12   :  { %3261 = shalt.err (!%p3258_p7)
}
  0x13   :  { %46 = dma.hbm_to_vmem [thread:$0]  %s3973_s5, 16, %s44_s10, [#allocation7]  }
  0x14   :  { %s3262_s26 = scalar_lea.hbm %s3975_s7, 16 }
  0x15   :  { %p3263_p8 = scmp.ne.s32.totalorder %s3975_s7, %s3262_s26  ;;  %p3266_p9 = scmp.lt.u32.totalorder %s3262_s26, %s3975_s7 }
  0x17   :  { %p3268_p10 = pnand %p3266_p9, %p3263_p8 }
  0x19   :  { %3271 = shalt.err (!%p3268_p10)
}
  0x1a   :  { %s3272_s11 = scalar_lea.vmem %s66_s12, 16  ;;  %s3276_s13 = scalar_lea.vmem %s66_s12, 32 }
  0x1b   :  { %p3273_p11 = scmp.ne.s32.totalorder %s66_s12, %s3272_s11  ;;  %p3277_p12 = scmp.lt.s32.totalorder %s66_s12, %s66_s12 }
  0x1c   :  { %p3278_p13 = scmp.lt.s32.totalorder %s3276_s13, %s3272_s11 }
  0x1e   :  { %p3279_p0 = por %p3278_p13, %p3277_p12 }
  0x20   :  { %p3280_p1 = pnand %p3279_p0, %p3273_p11 }
  0x22   :  { %3283 = shalt.err (!%p3280_p1)
}
  0x23   :  { %68 = dma.hbm_to_vmem [thread:$0]  %s3975_s7, 16, %s66_s12, [#allocation10]  }
  0x24   :  { %s3358_s14 = smov [#allocation4]   ;;  %s3284_s18 = scalar_lea.hbm %s3972_s4, 1024 }
  0x25   :  { %s30_s15 = sshll.u32 %s3358_s14, 4  ;;  %p3285_p2 = scmp.ne.s32.totalorder %s3972_s4, %s3284_s18  ;;  %s31_s15 = int_to_ptr.vmem [resolvable:$true] %s30_s15 }
  0x26   :  { %p3288_p3 = scmp.lt.u32.totalorder %s3284_s18, %s3972_s4 }
  0x28   :  { %p3290_p4 = pnand %p3288_p3, %p3285_p2 }
  0x2a   :  { %3293 = shalt.err (!%p3290_p4)
}
  0x2b   :  { %s3294_s23 = scalar_lea.vmem %s31_s15, 1024  ;;  %p3299_p6 = scmp.lt.s32.totalorder %s31_s15, %s31_s15 }
  0x2c   :  { %p3295_p5 = scmp.ne.s32.totalorder %s31_s15, %s3294_s23  ;;  %p3300_p7 = scmp.lt.s32.totalorder %s3294_s23, %s3294_s23 }
  0x2e   :  { %p3301_p8 = por %p3300_p7, %p3299_p6 }
  0x30   :  { %p3302_p9 = pnand %p3301_p8, %p3295_p5 }
  0x32   :  { %3305 = shalt.err (!%p3302_p9)
}
  0x33   :  { %s3359_s7 = smov 128   ;;  %s3360_s12 = smov 8  }
  0x34   :  { %36 = dma.hbm_to_vmem [thread:$0]  %s3972_s4, 1024, %s31_s15, [#allocation5], %s3359_s7, %s3359_s7, %s3360_s12  }
  0x35   :  { %s3361_s26 = smov [#allocation8]   ;;  %s3362_s28 = smov [#allocation11]  }
  0x36   :  { %s52_s27 = sshll.u32 %s3361_s26, 4  ;;  %s74_s29 = sshll.u32 %s3362_s28, 4  ;;  %s53_s27 = int_to_ptr.vmem [resolvable:$true] %s52_s27  ;;  %s75_s29 = int_to_ptr.vmem [resolvable:$true] %s74_s29 }
  0x37   :  { %s3306_s13 = scalar_lea.hbm %s3974_s6, 1024 }
  0x38   :  { %p3307_p10 = scmp.ne.s32.totalorder %s3974_s6, %s3306_s13  ;;  %p3310_p11 = scmp.lt.u32.totalorder %s3306_s13, %s3974_s6 }
  0x3a   :  { %p3312_p12 = pnand %p3310_p11, %p3307_p10 }
  0x3c   :  { %3315 = shalt.err (!%p3312_p12)
}
  0x3d   :  { %s3316_s4 = scalar_lea.vmem %s53_s27, 1024  ;;  %p3321_p0 = scmp.lt.s32.totalorder %s53_s27, %s53_s27 }
  0x3e   :  { %p3317_p13 = scmp.ne.s32.totalorder %s53_s27, %s3316_s4  ;;  %p3322_p1 = scmp.lt.s32.totalorder %s3316_s4, %s3316_s4 }
  0x40   :  { %p3323_p2 = por %p3322_p1, %p3321_p0 }
  0x42   :  { %p3324_p3 = pnand %p3323_p2, %p3317_p13 }
  0x44   :  { %3327 = shalt.err (!%p3324_p3)
}
  0x45   :  { %58 = dma.hbm_to_vmem [thread:$0]  %s3974_s6, 1024, %s53_s27, [#allocation7], %s3359_s7, %s3359_s7, %s3360_s12  }
  0x46   :  { %s3328_s20 = scalar_lea.hbm %s3976_s8, 512 }
  0x47   :  { %p3329_p4 = scmp.ne.s32.totalorder %s3976_s8, %s3328_s20  ;;  %p3332_p5 = scmp.lt.u32.totalorder %s3328_s20, %s3976_s8 }
  0x49   :  { %p3334_p6 = pnand %p3332_p5, %p3329_p4 }
  0x4b   :  { %3337 = shalt.err (!%p3334_p6)
}
  0x4c   :  { %s3338_s25 = scalar_lea.vmem %s75_s29, 512  ;;  %p3343_p8 = scmp.lt.s32.totalorder %s75_s29, %s75_s29 }
  0x4d   :  { %p3339_p7 = scmp.ne.s32.totalorder %s75_s29, %s3338_s25  ;;  %p3344_p9 = scmp.lt.s32.totalorder %s3338_s25, %s3338_s25 }
  0x4f   :  { %p3345_p10 = por %p3344_p9, %p3343_p8 }
  0x51   :  { %p3346_p11 = pnand %p3345_p10, %p3339_p7 }
  0x53   :  { %3349 = shalt.err (!%p3346_p11)
}
  0x54   :  { %80 = dma.hbm_to_vmem [thread:$0]  %s3976_s8, 512, %s75_s29, [#allocation10], %s3359_s7, %s3359_s7, %s3360_s12  }
  0x55   :  { %3350 = dma.done.wait [#allocation5], 1024  }
  0x56   :  { %3351 = vsyncadd [#allocation5], 4294966272 }
  0x57   :  { %3352 = dma.done.wait [#allocation7], 1040  }
  0x58   :  { %3353 = vsyncadd [#allocation7], 4294966256 }
  0x59   :  { %3354 = dma.done.wait [#allocation10], 528  }
  0x5a   :  { %3355 = vsyncadd [#allocation10], 4294966768  ;;  %v3363_v0 = vmov 0.0   ;;  %v105_v1 = vld [vmem:[%s3969_s1 + $0x8] sm:$0xff]  ;;  %v107_v2 = vld [vmem:[%s3969_s1 + $0x18] sm:$0xff]  ;;  %vm124_vm0 = vcmask 261120   ;;  %v114_v33 = vlaneseq }
  0x5b   :  { %213 = vmatprep.mubr.f32.mxu0 %v3363_v0  ;;  %353 = vmatprep.mubr.f32.mxu1 %v3363_v0  ;;  %v104_v3 = vld [vmem:[%s3969_s1] sm:$0xff]  ;;  %v2879_v4 = vpack.c.bf16 %v107_v2, %v105_v1  ;;  %v106_v5 = vld [vmem:[%s3969_s1 + $0x10] sm:$0xff]  ;;  %v279_v6 = vld [vmem:[%s3971_s3 + $0x8] sm:$0xff]  ;;  %vm3367_vm1 = vmmov 0   ;;  %vm432_vm2 = vcmask 523520   ;;  %vm1538_vm3 = vcmask 523264  }
  0x5c   :  { %v281_v7 = vld [vmem:[%s3971_s3 + $0x18] sm:$0xff]  ;;  %v2881_v8 = vpack.c.bf16 %v106_v5, %v104_v3  ;;  %v278_v10 = vld [vmem:[%s3971_s3] sm:$0xff]  ;;  %v280_v11 = vld [vmem:[%s3971_s3 + $0x10] sm:$0xff]  ;;  %v115_v34 = vshrl.u32 %v114_v33, 7  ;;  %s3368_s24 = smov 96  }
  0x5d   :  { %v3508_v9 = vpack.c.bf16 %v281_v7, %v279_v6  ;;  %v109_v12 = vld [vmem:[%s3969_s1 + $0x28] sm:$0xff]  ;;  %2880 = vmatprep.subr.bf16.mxu0 %v2879_v4  ;;  %v3519_v13 = vpack.c.bf16 %v280_v11, %v278_v10  ;;  %v111_v14 = vld [vmem:[%s3969_s1 + $0x38] sm:$0xff]  ;;  %v108_v15 = vld [vmem:[%s3969_s1 + $0x20] sm:$0xff] }
  0x5e   :  { %v110_v16 = vld [vmem:[%s3969_s1 + $0x30] sm:$0xff]  ;;  %2882 = vmatpush1.bf16.msra.mxu0 %v2881_v8  ;;  %v2883_v17 = vpack.c.bf16 %v111_v14, %v109_v12  ;;  %v283_v19 = vld [vmem:[%s3971_s3 + $0x28] sm:$0xff]  ;;  %v285_v20 = vld [vmem:[%s3971_s3 + $0x38] sm:$0xff]  ;;  %v116_v35 = vsub.s32 0, %v115_v34  ;;  %v120_v37 = vsub.s32 1, %v115_v34 }
  0x5f   :  { %2888 = vmatprep.subr.bf16.mxu1 %v3508_v9  ;;  %v2885_v18 = vpack.c.bf16 %v110_v16, %v108_v15  ;;  %v282_v21 = vld [vmem:[%s3971_s3 + $0x20] sm:$0xff]  ;;  %v3541_v22 = vpack.c.bf16 %v285_v20, %v283_v19  ;;  %v284_v23 = vld [vmem:[%s3971_s3 + $0x30] sm:$0xff]  ;;  %v97_v26 = vld [vmem:[%s3968_s0 + $0x8] sm:$0xff] }
  0x60   :  { %2890 = vmatpush1.bf16.msra.mxu1 %v3519_v13  ;;  %2884 = vmatprep.subr.bf16.mxu0 %v2883_v17  ;;  %v3546_v24 = vpack.c.bf16 %v284_v23, %v282_v21  ;;  %v96_v25 = vld [vmem:[%s3968_s0] sm:$0xff]  ;;  %v98_v27 = vld [vmem:[%s3968_s0 + $0x10] sm:$0xff]  ;;  %v99_v28 = vld [vmem:[%s3968_s0 + $0x18] sm:$0xff] }
  0x61   :  { %2892 = vmatprep.subr.bf16.mxu1 %v3541_v22  ;;  %v100_v29 = vld [vmem:[%s3968_s0 + $0x20] sm:$0xff]  ;;  %v101_v30 = vld [vmem:[%s3968_s0 + $0x28] sm:$0xff]  ;;  %v102_v31 = vld [vmem:[%s3968_s0 + $0x30] sm:$0xff] }
  0x62   :  { %2886 = vmatpush1.bf16.msra.mxu0 %v2885_v18  ;;  %v103_v32 = vld [vmem:[%s3968_s0 + $0x38] sm:$0xff]  ;;  %v112_v36 = vld [vmem:[%s3970_s2] sm:$0x3]  ;;  %s3364_s0 = smov 64   ;;  %s3365_s2 = smov 32  }
  0x63   :  { %2920 = vmatprep.subr.bf16.mxu0 %v3508_v9  ;;  %v117_v38 = vrot.slane %v112_v36, %v116_v35  ;;  %v121_v39 = vrot.slane %v112_v36, %v120_v37 }
  0x64   :  { %2894 = vmatpush1.bf16.msra.mxu1 %v3546_v24 }
  0x65   :  { %2896 = vmatprep.subr.bf16.mxu1 %v3508_v9  ;;  %2614 = vmatmul.mubr.msk.f32.vlgmr.msra.gmra.mrb[0].mxu0 %vm124_vm0, %v96_v25 }
  0x66   :  { %219 = vmatprep.mubr.f32.mxu0 %v3363_v0  ;;  %2922 = vmatpush1.bf16.msra.mxu0 %v3519_v13 }
  0x67   :  { %354 = vmatmul.mubr.f32.vlgmr.msra.gmra.mrb[0].mxu1 %v3363_v0  ;;  %2924 = vmatprep.subr.bf16.mxu0 %v3541_v22 }
  0x68   :  { %358 = vmatprep.mubr.f32.mxu1 %v3363_v0  ;;  %2898 = vmatpush1.bf16.msra.mxu1 %v3519_v13 }
  0x69   :  { %2900 = vmatprep.subr.bf16.mxu1 %v3541_v22  ;;  %2615 = vmatmul.mubr.msk.f32.gmra.mrb[2].mxu0 %vm124_vm0, %v97_v26 }
  0x6a   :  { %225 = vmatprep.mubr.f32.mxu0 %v3363_v0  ;;  %2926 = vmatpush1.bf16.msra.mxu0 %v3546_v24 }
  0x6b   :  { %359 = vmatmul.mubr.f32.gmra.mrb[2].mxu1 %v3363_v0  ;;  %2936 = vmatprep.subr.bf16.mxu0 %v3508_v9 }
  0x6c   :  { %2902 = vmatpush1.bf16.msra.mxu1 %v3546_v24  ;;  %512 = vmatprep.mubr.f32.mxu1 %v3363_v0 }
  0x6d   :  { %2904 = vmatprep.subr.bf16.mxu1 %v3508_v9  ;;  %2616 = vmatmul.mubr.msk.f32.gmra.mrb[4].mxu0 %vm124_vm0, %v98_v27 }
  0x6e   :  { %231 = vmatprep.mubr.f32.mxu0 %v3363_v0 }
  0x71   :  { %2617 = vmatmul.mubr.msk.f32.gmra.mrb[6].mxu0 %vm124_vm0, %v99_v28 }
  0x72   :  { %237 = vmatprep.mubr.f32.mxu0 %v3363_v0 }
  0x75   :  { %2618 = vmatmul.mubr.msk.f32.gmra.mrb[8].mxu0 %vm124_vm0, %v100_v29 }
  0x76   :  { %243 = vmatprep.mubr.f32.mxu0 %v3363_v0 }
  0x79   :  { %2619 = vmatmul.mubr.msk.f32.gmra.mrb[10].mxu0 %vm124_vm0, %v101_v30 }
  0x7a   :  { %249 = vmatprep.mubr.f32.mxu0 %v3363_v0 }
  0x7d   :  { %2620 = vmatmul.mubr.msk.f32.gmra.mrb[12].mxu0 %vm124_vm0, %v102_v31 }
  0x7e   :  { %255 = vmatprep.mubr.f32.mxu0 %v3363_v0 }
  0x81   :  { %2621 = vmatmul.mubr.msk.f32.gmra.mrb[14].mxu0 %vm124_vm0, %v103_v32 }
  0x82   :  { %989 = vmatprep.mubr.f32.mxu0 %v3363_v0 }
 0x138   :  { %v215_v40 = vpop.f32.mrb[0].mxu0 }
 0x139   :  { %v216_v41 = vadd.f32 %v215_v40, %v117_v38  ;;  %v217_v42 = vpop.f32.mrb[1].mxu0 }
 0x13a   :  { %v355_v43 = vpop.f32.mrb[0].mxu1  ;;  %v3607_v44 = vadd.f32 %v217_v42, %v121_v39 }
 0x13b   :  { %v357_v45 = vpop.f32.mrb[1].mxu1  ;;  %v368_v46 = vadd.f32 %v355_v43, %v216_v41 }
 0x13c   :  { %v221_v47 = vpop.f32.mrb[2].mxu0 }
 0x13d   :  { %3040 = vtanh.f32 %v368_v46  ;;  %v3609_v48 = vadd.f32 %v221_v47, %v117_v38  ;;  %v223_v49 = vpop.f32.mrb[3].mxu0  ;;  %v2622_v19 = vmul.f32 -1.442695, %v368_v46 }
 0x13e   :  { %v360_v50 = vpop.f32.mrb[2].mxu1  ;;  %v3611_v51 = vadd.f32 %v223_v49, %v121_v39 }
 0x13f   :  { %v361_v52 = vpop.f32.mrb[3].mxu1 }
 0x140   :  { %v227_v53 = vpop.f32.mrb[4].mxu0 }
 0x141   :  { %v3613_v54 = vadd.f32 %v227_v53, %v117_v38  ;;  %v229_v55 = vpop.f32.mrb[5].mxu0 }
 0x142   :  { %v3615_v56 = vadd.f32 %v229_v55, %v121_v39 }
 0x144   :  { %v233_v57 = vpop.f32.mrb[6].mxu0 }
 0x145   :  { %v3617_v58 = vadd.f32 %v233_v57, %v117_v38  ;;  %v235_v59 = vpop.f32.mrb[7].mxu0 }
 0x146   :  { %v3619_v60 = vadd.f32 %v235_v59, %v121_v39 }
 0x147   :  { %v3041_v61 = vpop.eup %3040 }
 0x148   :  { %v239_v62 = vpop.f32.mrb[8].mxu0  ;;  %392 = vrot.lane.b32.xlu0 %v3041_v61, %s3364_s0 }
 0x149   :  { %v3622_v63 = vadd.f32 %v239_v62, %v117_v38  ;;  %v241_v1 = vpop.f32.mrb[9].mxu0 }
 0x14a   :  { %v3624_v2 = vadd.f32 %v241_v1, %v121_v39 }
 0x14c   :  { %v245_v3 = vpop.f32.mrb[10].mxu0 }
 0x14d   :  { %v3626_v4 = vadd.f32 %v245_v3, %v117_v38  ;;  %v247_v5 = vpop.f32.mrb[11].mxu0 }
 0x14e   :  { %v3628_v6 = vadd.f32 %v247_v5, %v121_v39 }
 0x150   :  { %v251_v7 = vpop.f32.mrb[12].mxu0 }
 0x151   :  { %v3630_v8 = vadd.f32 %v251_v7, %v117_v38  ;;  %v253_v10 = vpop.f32.mrb[13].mxu0 }
 0x152   :  { %v3632_v11 = vadd.f32 %v253_v10, %v121_v39 }
 0x154   :  { %v257_v12 = vpop.f32.mrb[14].mxu0 }
 0x155   :  { %v3634_v14 = vadd.f32 %v257_v12, %v117_v38  ;;  %v259_v15 = vpop.f32.mrb[15].mxu0 }
 0x156   :  { %v260_v16 = vadd.f32 %v259_v15, %v121_v39 }
 0x158   :  { %v373_v17 = vadd.f32 %v361_v52, %v260_v16 }
 0x15a   :  { %3042 = vtanh.f32 %v373_v17  ;;  %v2623_v23 = vmul.f32 -1.442695, %v373_v17 }
 0x15b   :  { %3044 = vpow2.f32 %v2622_v19 }
 0x164   :  { %v3043_v18 = vpop.eup %3042 }
 0x165   :  { %394 = vrot.lane.b32.xlu0 %v3043_v18, %s3364_s0  ;;  %v3045_v20 = vpop.eup %3044 }
 0x166   :  { %v380_v21 = vadd.f32 1.0, %v3045_v20 }
 0x168   :  { %3046 = vrcp.f32 %v380_v21 }
 0x169   :  { %3048 = vpow2.f32 %v2623_v23 }
 0x172   :  { %v3047_v25 = vpop.eup %3046 }
 0x173   :  { %v3049_v28 = vpop.eup %3048  ;;  %v388_v33 = vmul.f32 0.0, %v3047_v25 }
 0x174   :  { %v381_v29 = vadd.f32 1.0, %v3049_v28 }
 0x176   :  { %3050 = vrcp.f32 %v381_v29 }
 0x180   :  { %v3051_v30 = vpop.eup %3050 }
 0x181   :  { %v389_v37 = vmul.f32 0.0, %v3051_v30 }
 0x1ba   :  { %v393_v26 = vpop.permute.xlu0 %392 }
 0x1bb   :  { %v398_v27 = vmul.f32 %v3047_v25, %v393_v26 }
 0x1bd   :  { %402 = vrot.lane.b32.xlu1 %v398_v27, %s3365_s2 }
 0x1d7   :  { %v395_v31 = vpop.permute.xlu0 %394 }
 0x1d8   :  { %v399_v32 = vmul.f32 %v3051_v30, %v395_v31 }
 0x1da   :  { %404 = vrot.lane.b32.xlu1 %v399_v32, %s3365_s2 }
 0x22f   :  { %v403_v34 = vpop.permute.xlu1 %402 }
 0x230   :  { %v408_v35 = vadd.f32 %v403_v34, %v388_v33 }
 0x232   :  { %3052 = vtanh.f32 %v408_v35 }
 0x23c   :  { %v3053_v36 = vpop.eup %3052 }
 0x23d   :  { %414 = vrot.lane.b32.xlu0 %v3053_v36, %s3364_s0 }
 0x24c   :  { %v405_v38 = vpop.permute.xlu1 %404 }
 0x24d   :  { %v409_v39 = vadd.f32 %v405_v38, %v389_v37 }
 0x24f   :  { %3054 = vtanh.f32 %v409_v39 }
 0x259   :  { %v3055_v40 = vpop.eup %3054 }
 0x25a   :  { %416 = vrot.lane.b32.xlu1 %v3055_v40, %s3364_s0 }
 0x2af   :  { %v415_v41 = vpop.permute.xlu0 %414 }
 0x2b0   :  { %v420_v42 = vmul.f32 %v3047_v25, %v415_v41 }
 0x2b2   :  { %423 = vrot.lane.b32.xlu0 %v420_v42, %s3365_s2 }
 0x2cc   :  { %v417_v43 = vpop.permute.xlu1 %416 }
 0x2cd   :  { %v3642_v45 = vmul.f32 %v3051_v30, %v417_v43 }
 0x2cf   :  { %442 = vrot.lane.b32.xlu1 %v3642_v45, %s3365_s2 }
 0x324   :  { %v424_v46 = vpop.permute.xlu0 %423 }
 0x325   :  { %426 = vst.msk [vmem:[#allocation3] sm:$0xff] %vm124_vm0, %v424_v46  ;;  %2624 = vmatmul.mubr.msk.f32.vlgmr.msra.gmra.mrb[4].mxu1 %vm124_vm0, %v424_v46 }
 0x326   :  { %517 = vmatprep.mubr.f32.mxu1 %v3363_v0  ;;  %2906 = vmatpush1.bf16.msra.mxu1 %v3519_v13 }
 0x327   :  { %2908 = vmatprep.subr.bf16.mxu1 %v3541_v22 }
 0x32a   :  { %2910 = vmatpush1.bf16.msra.mxu1 %v3546_v24 }
 0x32b   :  { %2912 = vmatprep.subr.bf16.mxu1 %v3508_v9 }
 0x341   :  { %v443_v47 = vpop.permute.xlu1 %442 }
 0x342   :  { %2625 = vmatmul.mubr.msk.f32.gmra.mrb[6].mxu1 %vm124_vm0, %v443_v47 }
 0x343   :  { %671 = vmatprep.mubr.f32.mxu1 %v3363_v0 }
 0x3f8   :  { %v514_v49 = vpop.f32.mrb[4].mxu1 }
 0x3f9   :  { %v527_v50 = vadd.f32 %v514_v49, %v3609_v48  ;;  %v516_v52 = vpop.f32.mrb[5].mxu1 }
 0x3fb   :  { %3056 = vtanh.f32 %v527_v50  ;;  %v2626_v62 = vmul.f32 -1.442695, %v527_v50 }
 0x405   :  { %v3057_v53 = vpop.eup %3056 }
 0x406   :  { %551 = vrot.lane.b32.xlu0 %v3057_v53, %s3364_s0 }
 0x415   :  { %v519_v55 = vpop.f32.mrb[6].mxu1 }
 0x416   :  { %v520_v57 = vpop.f32.mrb[7].mxu1 }
 0x417   :  { %v532_v59 = vadd.f32 %v520_v57, %v3632_v11 }
 0x419   :  { %3058 = vtanh.f32 %v532_v59  ;;  %v2627_v5 = vmul.f32 -1.442695, %v532_v59 }
 0x41a   :  { %3060 = vpow2.f32 %v2626_v62 }
 0x423   :  { %v3059_v61 = vpop.eup %3058 }
 0x424   :  { %553 = vrot.lane.b32.xlu1 %v3059_v61, %s3364_s0  ;;  %v3061_v1 = vpop.eup %3060 }
 0x425   :  { %v539_v3 = vadd.f32 1.0, %v3061_v1 }
 0x427   :  { %3062 = vrcp.f32 %v539_v3 }
 0x428   :  { %3064 = vpow2.f32 %v2627_v5 }
 0x431   :  { %v3063_v48 = vpop.eup %3062 }
 0x432   :  { %v3065_v12 = vpop.eup %3064  ;;  %v547_v18 = vmul.f32 %v3063_v48, %v408_v35 }
 0x433   :  { %v540_v15 = vadd.f32 1.0, %v3065_v12 }
 0x435   :  { %3066 = vrcp.f32 %v540_v15 }
 0x43f   :  { %v3067_v11 = vpop.eup %3066 }
 0x440   :  { %v548_v23 = vmul.f32 %v3067_v11, %v409_v39 }
 0x478   :  { %v552_v7 = vpop.permute.xlu0 %551 }
 0x479   :  { %v557_v10 = vmul.f32 %v3063_v48, %v552_v7 }
 0x47b   :  { %561 = vrot.lane.b32.xlu0 %v557_v10, %s3365_s2 }
 0x496   :  { %v554_v16 = vpop.permute.xlu1 %553 }
 0x497   :  { %v558_v17 = vmul.f32 %v3067_v11, %v554_v16 }
 0x499   :  { %563 = vrot.lane.b32.xlu1 %v558_v17, %s3365_s2 }
 0x4ed   :  { %v562_v19 = vpop.permute.xlu0 %561 }
 0x4ee   :  { %v567_v20 = vadd.f32 %v562_v19, %v547_v18 }
 0x4f0   :  { %3068 = vtanh.f32 %v567_v20 }
 0x4fa   :  { %v3069_v21 = vpop.eup %3068 }
 0x4fb   :  { %573 = vrot.lane.b32.xlu0 %v3069_v21, %s3364_s0 }
 0x50b   :  { %v564_v25 = vpop.permute.xlu1 %563 }
 0x50c   :  { %v568_v26 = vadd.f32 %v564_v25, %v548_v23 }
 0x50e   :  { %3070 = vtanh.f32 %v568_v26 }
 0x518   :  { %v3071_v27 = vpop.eup %3070 }
 0x519   :  { %575 = vrot.lane.b32.xlu1 %v3071_v27, %s3364_s0 }
 0x56d   :  { %v574_v28 = vpop.permute.xlu0 %573 }
 0x56e   :  { %v579_v29 = vmul.f32 %v3063_v48, %v574_v28 }
 0x570   :  { %582 = vrot.lane.b32.xlu0 %v579_v29, %s3365_s2 }
 0x58b   :  { %v576_v30 = vpop.permute.xlu1 %575 }
 0x58c   :  { %v3664_v31 = vmul.f32 %v3067_v11, %v576_v30 }
 0x58e   :  { %601 = vrot.lane.b32.xlu1 %v3664_v31, %s3365_s2 }
 0x5e2   :  { %v583_v32 = vpop.permute.xlu0 %582 }
 0x5e3   :  { %586 = vst.msk [vmem:[#allocation3 + $0x8] sm:$0xff] %vm124_vm0, %v583_v32  ;;  %2628 = vmatmul.mubr.msk.f32.vlgmr.msra.gmra.mrb[8].mxu1 %vm124_vm0, %v583_v32 }
 0x5e4   :  { %676 = vmatprep.mubr.f32.mxu1 %v3363_v0  ;;  %2914 = vmatpush1.bf16.msra.mxu1 %v3519_v13 }
 0x5e5   :  { %2916 = vmatprep.subr.bf16.mxu1 %v3541_v22 }
 0x5e8   :  { %2918 = vmatpush1.bf16.msra.mxu1 %v3546_v24 }
 0x5e9   :  { %2928 = vmatprep.subr.bf16.mxu1 %v3508_v9 }
 0x600   :  { %v602_v33 = vpop.permute.xlu1 %601 }
 0x601   :  { %2629 = vmatmul.mubr.msk.f32.gmra.mrb[10].mxu1 %vm124_vm0, %v602_v33 }
 0x602   :  { %830 = vmatprep.mubr.f32.mxu1 %v3363_v0 }
 0x6b6   :  { %v673_v34 = vpop.f32.mrb[8].mxu1 }
 0x6b7   :  { %v686_v35 = vadd.f32 %v673_v34, %v3613_v54  ;;  %v675_v36 = vpop.f32.mrb[9].mxu1 }
 0x6b9   :  { %3072 = vtanh.f32 %v686_v35  ;;  %v2630_v42 = vmul.f32 -1.442695, %v686_v35 }
 0x6c3   :  { %v3073_v37 = vpop.eup %3072 }
 0x6c4   :  { %710 = vrot.lane.b32.xlu0 %v3073_v37, %s3364_s0 }
 0x6d4   :  { %v678_v38 = vpop.f32.mrb[10].mxu1 }
 0x6d5   :  { %v679_v39 = vpop.f32.mrb[11].mxu1 }
 0x6d6   :  { %v691_v40 = vadd.f32 %v679_v39, %v3628_v6 }
 0x6d8   :  { %3074 = vtanh.f32 %v691_v40  ;;  %v2631_v54 = vmul.f32 -1.442695, %v691_v40 }
 0x6d9   :  { %3076 = vpow2.f32 %v2630_v42 }
 0x6e2   :  { %v3075_v41 = vpop.eup %3074 }
 0x6e3   :  { %712 = vrot.lane.b32.xlu1 %v3075_v41, %s3364_s0  ;;  %v3077_v43 = vpop.eup %3076 }
 0x6e4   :  { %v698_v46 = vadd.f32 1.0, %v3077_v43 }
 0x6e6   :  { %3078 = vrcp.f32 %v698_v46 }
 0x6e7   :  { %3080 = vpow2.f32 %v2631_v54 }
 0x6f0   :  { %v3079_v47 = vpop.eup %3078 }
 0x6f1   :  { %v3081_v52 = vpop.eup %3080  ;;  %v706_v59 = vmul.f32 %v3079_v47, %v567_v20 }
 0x6f2   :  { %v699_v53 = vadd.f32 1.0, %v3081_v52 }
 0x6f4   :  { %3082 = vrcp.f32 %v699_v53 }
 0x6fe   :  { %v3083_v6 = vpop.eup %3082 }
 0x6ff   :  { %v707_v3 = vmul.f32 %v3083_v6, %v568_v26 }
 0x736   :  { %v711_v49 = vpop.permute.xlu0 %710 }
 0x737   :  { %v716_v50 = vmul.f32 %v3079_v47, %v711_v49 }
 0x739   :  { %720 = vrot.lane.b32.xlu0 %v716_v50, %s3365_s2 }
 0x755   :  { %v713_v55 = vpop.permute.xlu1 %712 }
 0x756   :  { %v717_v57 = vmul.f32 %v3083_v6, %v713_v55 }
 0x758   :  { %722 = vrot.lane.b32.xlu1 %v717_v57, %s3365_s2 }
 0x7ab   :  { %v721_v61 = vpop.permute.xlu0 %720 }
 0x7ac   :  { %v726_v62 = vadd.f32 %v721_v61, %v706_v59 }
 0x7ae   :  { %3084 = vtanh.f32 %v726_v62 }
 0x7b8   :  { %v3085_v1 = vpop.eup %3084 }
 0x7b9   :  { %732 = vrot.lane.b32.xlu0 %v3085_v1, %s3364_s0 }
 0x7ca   :  { %v723_v5 = vpop.permute.xlu1 %722 }
 0x7cb   :  { %v727_v48 = vadd.f32 %v723_v5, %v707_v3 }
 0x7cd   :  { %3086 = vtanh.f32 %v727_v48 }
 0x7d7   :  { %v3087_v7 = vpop.eup %3086 }
 0x7d8   :  { %734 = vrot.lane.b32.xlu1 %v3087_v7, %s3364_s0 }
 0x82b   :  { %v733_v10 = vpop.permute.xlu0 %732 }
 0x82c   :  { %v738_v12 = vmul.f32 %v3079_v47, %v733_v10 }
 0x82e   :  { %741 = vrot.lane.b32.xlu0 %v738_v12, %s3365_s2 }
 0x84a   :  { %v735_v15 = vpop.permute.xlu1 %734 }
 0x84b   :  { %v3686_v11 = vmul.f32 %v3083_v6, %v735_v15 }
 0x84d   :  { %760 = vrot.lane.b32.xlu1 %v3686_v11, %s3365_s2 }
 0x8a0   :  { %v742_v16 = vpop.permute.xlu0 %741 }
 0x8a1   :  { %745 = vst.msk [vmem:[#allocation3 + $0x10] sm:$0xff] %vm124_vm0, %v742_v16  ;;  %2632 = vmatmul.mubr.msk.f32.vlgmr.msra.gmra.mrb[12].mxu1 %vm124_vm0, %v742_v16 }
 0x8a2   :  { %835 = vmatprep.mubr.f32.mxu1 %v3363_v0  ;;  %2930 = vmatpush1.bf16.msra.mxu1 %v3519_v13 }
 0x8a3   :  { %2932 = vmatprep.subr.bf16.mxu1 %v3541_v22 }
 0x8a6   :  { %2934 = vmatpush1.bf16.msra.mxu1 %v3546_v24 }
 0x8a7   :  { %2944 = vmatprep.subr.bf16.mxu1 %v3508_v9 }
 0x8bf   :  { %v761_v17 = vpop.permute.xlu1 %760 }
 0x8c0   :  { %2633 = vmatmul.mubr.msk.f32.gmra.mrb[14].mxu1 %vm124_vm0, %v761_v17 }
 0x8c1   :  { %1140 = vmatprep.mubr.f32.mxu1 %v3363_v0 }
 0x974   :  { %v832_v18 = vpop.f32.mrb[12].mxu1 }
 0x975   :  { %v845_v19 = vadd.f32 %v832_v18, %v3617_v58  ;;  %v834_v20 = vpop.f32.mrb[13].mxu1 }
 0x977   :  { %3088 = vtanh.f32 %v845_v19  ;;  %v2634_v9 = vmul.f32 -1.442695, %v845_v19 }
 0x981   :  { %v3089_v21 = vpop.eup %3088 }
 0x982   :  { %869 = vrot.lane.b32.xlu0 %v3089_v21, %s3364_s0 }
 0x993   :  { %v837_v23 = vpop.f32.mrb[14].mxu1 }
 0x994   :  { %v838_v25 = vpop.f32.mrb[15].mxu1 }
 0x995   :  { %v850_v26 = vadd.f32 %v838_v25, %v3624_v2 }
 0x997   :  { %3090 = vtanh.f32 %v850_v26  ;;  %v2635_v32 = vmul.f32 -1.442695, %v850_v26 }
 0x998   :  { %3092 = vpow2.f32 %v2634_v9 }
 0x9a1   :  { %v3091_v27 = vpop.eup %3090 }
 0x9a2   :  { %871 = vrot.lane.b32.xlu1 %v3091_v27, %s3364_s0  ;;  %v3093_v28 = vpop.eup %3092 }
 0x9a3   :  { %v857_v29 = vadd.f32 1.0, %v3093_v28 }
 0x9a5   :  { %3094 = vrcp.f32 %v857_v29 }
 0x9a6   :  { %3096 = vpow2.f32 %v2635_v32 }
 0x9af   :  { %v3095_v30 = vpop.eup %3094 }
 0x9b0   :  { %v3097_v34 = vpop.eup %3096  ;;  %v865_v38 = vmul.f32 %v3095_v30, %v726_v62 }
 0x9b1   :  { %v858_v35 = vadd.f32 1.0, %v3097_v34 }
 0x9b3   :  { %3098 = vrcp.f32 %v858_v35 }
 0x9bd   :  { %v3099_v2 = vpop.eup %3098 }
 0x9be   :  { %v866_v42 = vmul.f32 %v3099_v2, %v727_v48 }
 0x9f4   :  { %v870_v58 = vpop.permute.xlu0 %869 }
 0x9f5   :  { %v875_v33 = vmul.f32 %v3095_v30, %v870_v58 }
 0x9f7   :  { %879 = vrot.lane.b32.xlu0 %v875_v33, %s3365_s2 }
 0xa14   :  { %v872_v36 = vpop.permute.xlu1 %871 }
 0xa15   :  { %v876_v37 = vmul.f32 %v3099_v2, %v872_v36 }
 0xa17   :  { %881 = vrot.lane.b32.xlu1 %v876_v37, %s3365_s2 }
 0xa69   :  { %v880_v39 = vpop.permute.xlu0 %879 }
 0xa6a   :  { %v885_v40 = vadd.f32 %v880_v39, %v865_v38 }
 0xa6c   :  { %3100 = vtanh.f32 %v885_v40 }
 0xa76   :  { %v3101_v41 = vpop.eup %3100 }
 0xa77   :  { %891 = vrot.lane.b32.xlu0 %v3101_v41, %s3364_s0 }
 0xa89   :  { %v882_v43 = vpop.permute.xlu1 %881 }
 0xa8a   :  { %v886_v46 = vadd.f32 %v882_v43, %v866_v42 }
 0xa8c   :  { %3102 = vtanh.f32 %v886_v46 }
 0xa96   :  { %v3103_v47 = vpop.eup %3102 }
 0xa97   :  { %893 = vrot.lane.b32.xlu1 %v3103_v47, %s3364_s0 }
 0xae9   :  { %v892_v54 = vpop.permute.xlu0 %891 }
 0xaea   :  { %v897_v49 = vmul.f32 %v3095_v30, %v892_v54 }
 0xaec   :  { %900 = vrot.lane.b32.xlu0 %v897_v49, %s3365_s2 }
 0xb09   :  { %v894_v50 = vpop.permute.xlu1 %893 }
 0xb0a   :  { %v3708_v52 = vmul.f32 %v3099_v2, %v894_v50 }
 0xb0c   :  { %919 = vrot.lane.b32.xlu1 %v3708_v52, %s3365_s2 }
 0xb5e   :  { %v901_v53 = vpop.permute.xlu0 %900 }
 0xb5f   :  { %904 = vst.msk [vmem:[#allocation3 + $0x18] sm:$0xff] %vm124_vm0, %v901_v53  ;;  %2636 = vmatmul.mubr.msk.f32.vlgmr.msra.gmra.mrb[16].mxu0 %vm124_vm0, %v901_v53 }
 0xb60   :  { %994 = vmatprep.mubr.f32.mxu0 %v3363_v0  ;;  %2938 = vmatpush1.bf16.msra.mxu0 %v3519_v13 }
 0xb61   :  { %2940 = vmatprep.subr.bf16.mxu0 %v3541_v22 }
 0xb64   :  { %2942 = vmatpush1.bf16.msra.mxu0 %v3546_v24 }
 0xb7e   :  { %v920_v6 = vpop.permute.xlu1 %919 }
 0xb7f   :  { %2637 = vmatmul.mubr.msk.f32.gmra.mrb[18].mxu0 %vm124_vm0, %v920_v6 }
 0xb80   :  { %1291 = vmatprep.mubr.f32.mxu0 %v3363_v0 }
 0xc32   :  { %v991_v55 = vpop.f32.mrb[16].mxu0 }
 0xc33   :  { %v1001_v57 = vadd.f32 %v991_v55, %v3622_v63  ;;  %v993_v59 = vpop.f32.mrb[17].mxu0 }
 0xc35   :  { %3104 = vtanh.f32 %v1001_v57  ;;  %v2638_v48 = vmul.f32 -1.442695, %v1001_v57 }
 0xc3f   :  { %v3105_v61 = vpop.eup %3104 }
 0xc40   :  { %1022 = vrot.lane.b32.xlu0 %v3105_v61, %s3364_s0 }
 0xc52   :  { %v996_v62 = vpop.f32.mrb[18].mxu0 }
 0xc53   :  { %v997_v1 = vpop.f32.mrb[19].mxu0 }
 0xc54   :  { %v1003_v3 = vadd.f32 %v997_v1, %v3619_v60 }
 0xc56   :  { %3106 = vtanh.f32 %v1003_v3  ;;  %v2639_v16 = vmul.f32 -1.442695, %v1003_v3 }
 0xc57   :  { %3108 = vpow2.f32 %v2638_v48 }
 0xc60   :  { %v3107_v5 = vpop.eup %3106 }
 0xc61   :  { %1024 = vrot.lane.b32.xlu1 %v3107_v5, %s3364_s0  ;;  %v3109_v7 = vpop.eup %3108 }
 0xc62   :  { %v1010_v10 = vadd.f32 1.0, %v3109_v7 }
 0xc64   :  { %3110 = vrcp.f32 %v1010_v10 }
 0xc65   :  { %3112 = vpow2.f32 %v2639_v16 }
 0xc6e   :  { %v3111_v12 = vpop.eup %3110 }
 0xc6f   :  { %v3113_v17 = vpop.eup %3112  ;;  %v1018_v21 = vmul.f32 %v3111_v12, %v885_v40 }
 0xc70   :  { %v1011_v18 = vadd.f32 1.0, %v3113_v17 }
 0xc72   :  { %3114 = vrcp.f32 %v1011_v18 }
 0xc7c   :  { %v3115_v60 = vpop.eup %3114 }
 0xc7d   :  { %v1019_v27 = vmul.f32 %v3115_v60, %v886_v46 }
 0xcb2   :  { %v1023_v63 = vpop.permute.xlu0 %1022 }
 0xcb3   :  { %v1028_v15 = vmul.f32 %v3111_v12, %v1023_v63 }
 0xcb5   :  { %1032 = vrot.lane.b32.xlu0 %v1028_v15, %s3365_s2 }
 0xcd3   :  { %v1025_v19 = vpop.permute.xlu1 %1024 }
 0xcd4   :  { %v1029_v20 = vmul.f32 %v3115_v60, %v1025_v19 }
 0xcd6   :  { %1034 = vrot.lane.b32.xlu1 %v1029_v20, %s3365_s2 }
 0xd27   :  { %v1033_v23 = vpop.permute.xlu0 %1032 }
 0xd28   :  { %v1038_v25 = vadd.f32 %v1033_v23, %v1018_v21 }
 0xd2a   :  { %3116 = vtanh.f32 %v1038_v25 }
 0xd34   :  { %v3117_v26 = vpop.eup %3116 }
 0xd35   :  { %1044 = vrot.lane.b32.xlu0 %v3117_v26, %s3364_s0 }
 0xd48   :  { %v1035_v9 = vpop.permute.xlu1 %1034 }
 0xd49   :  { %v1039_v28 = vadd.f32 %v1035_v9, %v1019_v27 }
 0xd4b   :  { %3118 = vtanh.f32 %v1039_v28 }
 0xd55   :  { %v3119_v29 = vpop.eup %3118 }
 0xd56   :  { %1046 = vrot.lane.b32.xlu1 %v3119_v29, %s3364_s0 }
 0xda7   :  { %v1045_v30 = vpop.permute.xlu0 %1044 }
 0xda8   :  { %v1050_v58 = vmul.f32 %v3111_v12, %v1045_v30 }
 0xdaa   :  { %1053 = vrot.lane.b32.xlu0 %v1050_v58, %s3365_s2 }
 0xdc8   :  { %v1047_v32 = vpop.permute.xlu1 %1046 }
 0xdc9   :  { %v3729_v33 = vmul.f32 %v3115_v60, %v1047_v32 }
 0xdcb   :  { %1070 = vrot.lane.b32.xlu1 %v3729_v33, %s3365_s2 }
 0xe1c   :  { %v3733_v34 = vpop.permute.xlu0 %1053 }
 0xe1d   :  { %2640 = vmatmul.mubr.msk.f32.vlgmr.msra.gmra.mrb[16].mxu1 %vm124_vm0, %v3733_v34 }
 0xe1e   :  { %1145 = vmatprep.mubr.f32.mxu1 %v3363_v0  ;;  %2946 = vmatpush1.bf16.msra.mxu1 %v3519_v13 }
 0xe1f   :  { %2948 = vmatprep.subr.bf16.mxu1 %v3541_v22 }
 0xe22   :  { %2950 = vmatpush1.bf16.msra.mxu1 %v3546_v24 }
 0xe3d   :  { %v1071_v35 = vpop.permute.xlu1 %1070 }
 0xe3e   :  { %2641 = vmatmul.mubr.msk.f32.gmra.mrb[18].mxu1 %vm124_vm0, %v1071_v35 }
 0xe3f   :  { %1442 = vmatprep.mubr.f32.mxu1 %v3363_v0 }
 0xef0   :  { %v1142_v2 = vpop.f32.mrb[16].mxu1 }
 0xef1   :  { %v1152_v36 = vadd.f32 %v1142_v2, %v3626_v4  ;;  %v1144_v37 = vpop.f32.mrb[17].mxu1 }
 0xef3   :  { %3120 = vtanh.f32 %v1152_v36  ;;  %v2642_v24 = vmul.f32 -1.442695, %v1152_v36 }
 0xefd   :  { %v3121_v38 = vpop.eup %3120 }
 0xefe   :  { %1173 = vrot.lane.b32.xlu0 %v3121_v38, %s3364_s0 }
 0xf11   :  { %v1147_v39 = vpop.f32.mrb[18].mxu1 }
 0xf12   :  { %v1148_v40 = vpop.f32.mrb[19].mxu1 }
 0xf13   :  { %v1154_v13 = vadd.f32 %v1148_v40, %v3615_v56 }
 0xf15   :  { %3122 = vtanh.f32 %v1154_v13  ;;  %v2643_v47 = vmul.f32 -1.442695, %v1154_v13 }
 0xf16   :  { %3124 = vpow2.f32 %v2642_v24 }
 0xf1f   :  { %v3123_v22 = vpop.eup %3122 }
 0xf20   :  { %1175 = vrot.lane.b32.xlu1 %v3123_v22, %s3364_s0  ;;  %v3125_v41 = vpop.eup %3124 }
 0xf21   :  { %v1161_v42 = vadd.f32 1.0, %v3125_v41 }
 0xf23   :  { %3126 = vrcp.f32 %v1161_v42 }
 0xf24   :  { %3128 = vpow2.f32 %v2643_v47 }
 0xf2d   :  { %v3127_v43 = vpop.eup %3126 }
 0xf2e   :  { %v3129_v54 = vpop.eup %3128  ;;  %v1169_v6 = vmul.f32 %v3127_v43, %v1038_v25 }
 0xf2f   :  { %v1162_v49 = vadd.f32 1.0, %v3129_v54 }
 0xf31   :  { %3130 = vrcp.f32 %v1162_v49 }
 0xf3b   :  { %v3131_v56 = vpop.eup %3130 }
 0xf3c   :  { %v1170_v61 = vmul.f32 %v3131_v56, %v1039_v28 }
 0xf70   :  { %v1174_v4 = vpop.permute.xlu0 %1173 }
 0xf71   :  { %v1179_v46 = vmul.f32 %v3127_v43, %v1174_v4 }
 0xf73   :  { %1183 = vrot.lane.b32.xlu0 %v1179_v46, %s3365_s2 }
 0xf92   :  { %v1176_v50 = vpop.permute.xlu1 %1175 }
 0xf93   :  { %v1180_v53 = vmul.f32 %v3131_v56, %v1176_v50 }
 0xf95   :  { %1185 = vrot.lane.b32.xlu1 %v1180_v53, %s3365_s2 }
 0xfe5   :  { %v1184_v55 = vpop.permute.xlu0 %1183 }
 0xfe6   :  { %v1189_v57 = vadd.f32 %v1184_v55, %v1169_v6 }
 0xfe8   :  { %3132 = vtanh.f32 %v1189_v57 }
 0xff2   :  { %v3133_v59 = vpop.eup %3132 }
 0xff3   :  { %1195 = vrot.lane.b32.xlu0 %v3133_v59, %s3364_s0 }
0x1007   :  { %v1186_v62 = vpop.permute.xlu1 %1185 }
0x1008   :  { %v1190_v1 = vadd.f32 %v1186_v62, %v1170_v61 }
0x100a   :  { %3134 = vtanh.f32 %v1190_v1 }
0x1014   :  { %v3135_v3 = vpop.eup %3134 }
0x1015   :  { %1197 = vrot.lane.b32.xlu1 %v3135_v3, %s3364_s0 }
0x1065   :  { %v1196_v5 = vpop.permute.xlu0 %1195 }
0x1066   :  { %v1201_v48 = vmul.f32 %v3127_v43, %v1196_v5  ;;  %v1523_v5 = vld [vmem:[#allocation4] sm:$0xff] }
0x1068   :  { %1204 = vrot.lane.b32.xlu0 %v1201_v48, %s3365_s2  ;;  %v1525_v48 = vld [vmem:[#allocation4 + $0x10] sm:$0xff] }
0x1087   :  { %v1198_v7 = vpop.permute.xlu1 %1197 }
0x1088   :  { %v3752_v10 = vmul.f32 %v3131_v56, %v1198_v7 }
0x108a   :  { %1221 = vrot.lane.b32.xlu1 %v3752_v10, %s3365_s2 }
0x10da   :  { %v3756_v12 = vpop.permute.xlu0 %1204 }
0x10db   :  { %2644 = vmatmul.mubr.msk.f32.vlgmr.msra.gmra.mrb[20].mxu0 %vm124_vm0, %v3756_v12 }
0x10dc   :  { %1296 = vmatprep.mubr.f32.mxu0 %v3363_v0 }
0x10fc   :  { %v1222_v63 = vpop.permute.xlu1 %1221 }
0x10fd   :  { %2645 = vmatmul.mubr.msk.f32.gmra.mrb[22].mxu0 %vm124_vm0, %v1222_v63  ;;  %v1526_v63 = vld [vmem:[#allocation4 + $0x18] sm:$0xff] }
0x11ae   :  { %v1293_v15 = vpop.f32.mrb[20].mxu0 }
0x11af   :  { %v1303_v16 = vadd.f32 %v1293_v15, %v3630_v8  ;;  %v1295_v17 = vpop.f32.mrb[21].mxu0  ;;  %v2955_v15 = vpack.c.bf16 %v1526_v63, %v1525_v48 }
0x11b0   :  { %v1527_v17 = vld [vmem:[#allocation4 + $0x20] sm:$0xff] }
0x11b1   :  { %3136 = vtanh.f32 %v1303_v16  ;;  %v2646_v23 = vmul.f32 -1.442695, %v1303_v16 }
0x11bb   :  { %v3137_v18 = vpop.eup %3136 }
0x11bc   :  { %1324 = vrot.lane.b32.xlu0 %v3137_v18, %s3364_s0  ;;  %v1528_v18 = vld [vmem:[#allocation4 + $0x28] sm:$0xff] }
0x11d0   :  { %v1298_v60 = vpop.f32.mrb[22].mxu0 }
0x11d1   :  { %v1299_v19 = vpop.f32.mrb[23].mxu0  ;;  %v2959_v60 = vpack.c.bf16 %v1528_v18, %v1527_v17 }
0x11d2   :  { %v1305_v20 = vadd.f32 %v1299_v19, %v3611_v51  ;;  %v1677_v19 = vld [vmem:[#allocation11] sm:$0xff] }
0x11d4   :  { %3138 = vtanh.f32 %v1305_v20  ;;  %v2647_v28 = vmul.f32 -1.442695, %v1305_v20  ;;  %v1678_v20 = vld [vmem:[#allocation11 + $0x8] sm:$0xff] }
0x11d5   :  { %3140 = vpow2.f32 %v2646_v23  ;;  %v3366_v23 = vmov 0.0|0.0  }
0x11d6   :  { %2967 = vmatprep.subr.bf16.mxu1 %v3366_v23 }
0x11de   :  { %v3139_v21 = vpop.eup %3138 }
0x11df   :  { %1326 = vrot.lane.b32.xlu1 %v3139_v21, %s3364_s0  ;;  %v3141_v25 = vpop.eup %3140  ;;  %v1529_v21 = vld [vmem:[#allocation4 + $0x30] sm:$0xff] }
0x11e0   :  { %v1312_v26 = vadd.f32 1.0, %v3141_v25  ;;  %v3790_v25 = vpack.c.bf16 %v1678_v20, %v1677_v19 }
0x11e2   :  { %3142 = vrcp.f32 %v1312_v26  ;;  %v1530_v26 = vld [vmem:[#allocation4 + $0x38] sm:$0xff] }
0x11e3   :  { %3144 = vpow2.f32 %v2647_v28 }
0x11ec   :  { %v3143_v27 = vpop.eup %3142 }
0x11ed   :  { %v3145_v29 = vpop.eup %3144  ;;  %v1320_v35 = vmul.f32 %v3143_v27, %v1189_v57 }
0x11ee   :  { %v1313_v30 = vadd.f32 1.0, %v3145_v29 }
0x11f0   :  { %3146 = vrcp.f32 %v1313_v30 }
0x11fa   :  { %v3147_v51 = vpop.eup %3146 }
0x11fb   :  { %v1321_v38 = vmul.f32 %v3147_v51, %v1190_v1 }
0x122e   :  { %v1325_v8 = vpop.permute.xlu0 %1324 }
0x122f   :  { %v1330_v9 = vmul.f32 %v3143_v27, %v1325_v8  ;;  %v1679_v8 = vld [vmem:[#allocation11 + $0x10] sm:$0xff] }
0x1231   :  { %1334 = vrot.lane.b32.xlu0 %v1330_v9, %s3365_s2  ;;  %v1680_v9 = vld [vmem:[#allocation11 + $0x18] sm:$0xff] }
0x1232   :  { %v3794_v28 = vpack.c.bf16 %v1680_v9, %v1679_v8 }
0x1251   :  { %v1327_v58 = vpop.permute.xlu1 %1326 }
0x1252   :  { %v1331_v32 = vmul.f32 %v3147_v51, %v1327_v58 }
0x1254   :  { %1336 = vrot.lane.b32.xlu1 %v1331_v32, %s3365_s2 }
0x12a3   :  { %v1335_v2 = vpop.permute.xlu0 %1334 }
0x12a4   :  { %v3768_v36 = vadd.f32 %v1335_v2, %v1320_v35 }
0x12a6   :  { %3148 = vtanh.f32 %v3768_v36 }
0x12b0   :  { %v3149_v37 = vpop.eup %3148 }
0x12b1   :  { %1346 = vrot.lane.b32.xlu0 %v3149_v37, %s3364_s0 }
0x12c6   :  { %v1337_v39 = vpop.permute.xlu1 %1336 }
0x12c7   :  { %v1341_v40 = vadd.f32 %v1337_v39, %v1321_v38  ;;  %v3817_v38 = vld [vmem:[#allocation6] ss:$0 sm:$0xff] }
0x12c9   :  { %3150 = vtanh.f32 %v1341_v40 }
0x12d3   :  { %v3151_v13 = vpop.eup %3150 }
0x12d4   :  { %1348 = vrot.lane.b32.xlu1 %v3151_v13, %s3364_s0 }
0x1323   :  { %v1347_v22 = vpop.permute.xlu0 %1346 }
0x1324   :  { %v1352_v24 = vmul.f32 %v3143_v27, %v1347_v22  ;;  %v2963_v27 = vpack.c.bf16 %v1530_v26, %v1529_v21 }
0x1326   :  { %1355 = vrot.lane.b32.xlu0 %v1352_v24, %s3365_s2 }
0x1346   :  { %v1349_v41 = vpop.permute.xlu1 %1348 }
0x1347   :  { %v1353_v42 = vmul.f32 %v3147_v51, %v1349_v41 }
0x1349   :  { %1372 = vrot.lane.b32.xlu1 %v1353_v42, %s3365_s2 }
0x1398   :  { %v3775_v43 = vpop.permute.xlu0 %1355 }
0x1399   :  { %2648 = vmatmul.mubr.msk.f32.vlgmr.msra.gmra.mrb[20].mxu1 %vm124_vm0, %v3775_v43 }
0x139a   :  { %1447 = vmatprep.mubr.f32.mxu1 %v3363_v0  ;;  %2969 = vmatpush3.bf16.msra.mxu1 %v3790_v25 }
0x139b   :  { %2970 = vmatprep.subr.bf16.mxu1 %v3366_v23 }
0x139e   :  { %2972 = vmatpush3.bf16.msra.mxu1 %v3794_v28 }
0x139f   :  { %2973 = vmatprep.subr.bf16.mxu1 %v3366_v23 }
0x13bb   :  { %v1373_v4 = vpop.permute.xlu1 %1372 }
0x13bc   :  { %2649 = vmatmul.mubr.msk.f32.gmra.mrb[22].mxu1 %vm124_vm0, %v1373_v4 }
0x13bd   :  { %2780 = vmatprep.mubr.msk.f32.mxu1 %vm3367_vm1, %v3363_v0 }
0x13c0   :  { %2781 = vmatmul.mubr.f32.vlgmr.msra.gmra.mrb[24].mxu1 %v3363_v0 }
0x13c1   :  { %2975 = vmatpush3.bf16.msra.mxu1 %v3790_v25  ;;  %2791 = vmatprep.mubr.msk.f32.mxu1 %vm3367_vm1, %v3363_v0 }
0x13c2   :  { %2976 = vmatprep.subr.bf16.mxu1 %v3366_v23 }
0x13c5   :  { %2978 = vmatpush3.bf16.msra.mxu1 %v3794_v28 }
0x13c6   :  { %2979 = vmatprep.subr.bf16.mxu1 %v3366_v23 }
0x146c   :  { %v1444_v46 = vpop.f32.mrb[20].mxu1 }
0x146d   :  { %v3782_v47 = vadd.f32 %v1444_v46, %v3634_v14  ;;  %v1446_v54 = vpop.f32.mrb[21].mxu1 }
0x146f   :  { %v2650_v21 = vmul.f32 -1.442695, %v3782_v47 }
0x148f   :  { %v1449_v49 = vpop.f32.mrb[22].mxu1 }
0x1490   :  { %v1450_v56 = vpop.f32.mrb[23].mxu1 }
0x1491   :  { %v1456_v50 = vadd.f32 %v1450_v56, %v3607_v44  ;;  %v1524_v44 = vld [vmem:[#allocation4 + $0x8] sm:$0xff] }
0x1492   :  { %v2951_v7 = vpack.c.bf16 %v1524_v44, %v1523_v5 }
0x1493   :  { %3152 = vtanh.f32 %v1456_v50  ;;  %v2651_v6 = vmul.f32 -1.442695, %v1456_v50  ;;  %v1747_v2 = vpop.f32.mrb[24].mxu1 }
0x1494   :  { %2952 = vmatprep.subr.bf16.mxu0 %v2951_v7  ;;  %v2782_v37 = vpop.f32.mrb[25].mxu1 }
0x1495   :  { %3154 = vpow2.f32 %v2651_v6  ;;  %2954 = vmatpush3.bf16.msra.mxu0 %v2951_v7 }
0x1496   :  { %2956 = vmatprep.subr.bf16.mxu0 %v2955_v15 }
0x1499   :  { %2958 = vmatpush3.bf16.msra.mxu0 %v2955_v15 }
0x149a   :  { %2960 = vmatprep.subr.bf16.mxu0 %v2959_v60 }
0x149d   :  { %v3153_v53 = vpop.eup %3152  ;;  %2962 = vmatpush3.bf16.msra.mxu0 %v2959_v60 }
0x149e   :  { %1477 = vrot.lane.b32.xlu0 %v3153_v53, %s3364_s0  ;;  %2964 = vmatprep.subr.bf16.mxu0 %v2963_v27 }
0x149f   :  { %v3155_v55 = vpop.eup %3154 }
0x14a0   :  { %v1464_v57 = vadd.f32 1.0, %v3155_v55 }
0x14a1   :  { %2966 = vmatpush3.bf16.msra.mxu0 %v2963_v27 }
0x14a2   :  { %3156 = vrcp.f32 %v1464_v57  ;;  %2985 = vmatprep.subr.bf16.mxu0 %v3366_v23 }
0x14ac   :  { %v3157_v59 = vpop.eup %3156 }
0x14ad   :  { %v1472_v14 = vmul.f32 %v3157_v59, %v1341_v40 }
0x1510   :  { %v1478_v61 = vpop.permute.xlu0 %1477 }
0x1511   :  { %v1482_v62 = vmul.f32 %v3157_v59, %v1478_v61 }
0x1513   :  { %1487 = vrot.lane.b32.xlu1 %v1482_v62, %s3365_s2 }
0x1585   :  { %v1488_v1 = vpop.permute.xlu1 %1487 }
0x1586   :  { %v1492_v3 = vadd.f32 %v1488_v1, %v1472_v14 }
0x1588   :  { %3158 = vtanh.f32 %v1492_v3 }
0x1592   :  { %v3159_v16 = vpop.eup %3158 }
0x1593   :  { %1499 = vrot.lane.b32.xlu0 %v3159_v16, %s3364_s0 }
0x1597   :  { %1360 = vrot.lane.b32.xlu0 %v1353_v42, %s3364_s0 }
0x1605   :  { %v1500_v29 = vpop.permute.xlu0 %1499 }
0x1606   :  { %v1504_v30 = vmul.f32 %v3157_v59, %v1500_v29 }
0x1608   :  { %1511 = vrot.lane.b32.xlu1 %v1504_v30, %s3364_s0 }
0x1609   :  { %v1361_v51 = vpop.permute.xlu0 %1360 }
0x160a   :  { %1363 = vst.msk [vmem:[#allocation3 + $0x8] sm:$0xff] %vm432_vm2, %v1361_v51 }
0x1611   :  { %v1516_v35 = vld [vmem:[#allocation3 + $0x8] sm:$0xff] }
0x167a   :  { %v1512_v58 = vpop.permute.xlu1 %1511 }
0x167b   :  { %1514 = vst.msk [vmem:[#allocation3] sm:$0xff] %vm432_vm2, %v1512_v58 }
0x1682   :  { %v1515_v32 = vld [vmem:[#allocation3] sm:$0xff] }
0x1683   :  { %2760 = vmatprep.mubr.msk.f32.mxu0 %vm1538_vm3, %v1515_v32 }
0x1684   :  { %2761 = vmatmul.mubr.msk.f32.vlgmr.msra.gmra.mrb[24].mxu0 %vm1538_vm3, %v1516_v35 }
0x1685   :  { %2987 = vmatpush3.bf16.msra.mxu0 %v3790_v25 }
0x1686   :  { %2988 = vmatprep.subr.bf16.mxu0 %v3366_v23 }
0x1689   :  { %2990 = vmatpush3.bf16.msra.mxu0 %v3794_v28 }
0x168a   :  { %2997 = vmatprep.subr.bf16.mxu0 %v3366_v23 }
0x1757   :  { %v2762_v39 = vpop.f32.mrb[24].mxu0 }
0x1758   :  { %v1629_v40 = vpop.f32.mrb[25].mxu0  ;;  %v1635_v61 = vadd.f32 %v2762_v39, %v3817_v38 }
0x1759   :  { %v1630_v13 = vadd.f32 %v3817_v38, %v1629_v40 }
0x175b   :  { %v1751_v22 = vadd.f32 %v1747_v2, %v1630_v13 }
0x175d   :  { %3160 = vtanh.f32 %v1751_v22  ;;  %v2661_v41 = vmul.f32 -1.442695, %v1751_v22 }
0x175f   :  { %3162 = vpow2.f32 %v2661_v41 }
0x1767   :  { %v3161_v24 = vpop.eup %3160 }
0x1768   :  { %1761 = vrot.lane.b32.xlu1 %v3161_v24, %s3364_s0 }
0x1769   :  { %v3163_v42 = vpop.eup %3162 }
0x176a   :  { %v1755_v4 = vadd.f32 1.0, %v3163_v42 }
0x176c   :  { %3164 = vrcp.f32 %v1755_v4 }
0x1776   :  { %v3165_v46 = vpop.eup %3164 }
0x1777   :  { %v1759_v56 = vmul.f32 0.0, %v3165_v46 }
0x17da   :  { %v1762_v54 = vpop.permute.xlu1 %1761 }
0x17db   :  { %v1764_v49 = vmul.f32 %v3165_v46, %v1762_v54 }
0x17dd   :  { %1766 = vrot.lane.b32.xlu0 %v1764_v49, %s3365_s2 }
0x184f   :  { %v1767_v50 = vpop.permute.xlu0 %1766 }
0x1850   :  { %v1769_v53 = vadd.f32 %v1767_v50, %v1759_v56 }
0x1852   :  { %3166 = vtanh.f32 %v1769_v53 }
0x185c   :  { %v3167_v6 = vpop.eup %3166 }
0x185d   :  { %1772 = vrot.lane.b32.xlu1 %v3167_v6, %s3364_s0 }
0x18cf   :  { %v1773_v55 = vpop.permute.xlu1 %1772 }
0x18d0   :  { %v1775_v57 = vmul.f32 %v3165_v46, %v1773_v55 }
0x18d2   :  { %1778 = vrot.lane.b32.xlu0 %v1775_v57, %s3365_s2 }
0x1944   :  { %v1779_v59 = vpop.permute.xlu0 %1778 }
0x1945   :  { %2792 = vmatmul.mubr.msk.f32.vlgmr.msra.gmra.mrb[26].mxu1 %vm124_vm0, %v1779_v59 }
0x1946   :  { %2981 = vmatpush3.bf16.msra.mxu1 %v3790_v25  ;;  %2802 = vmatprep.mubr.msk.f32.mxu1 %vm3367_vm1, %v3363_v0 }
0x1947   :  { %2982 = vmatprep.subr.bf16.mxu1 %v3366_v23 }
0x194a   :  { %2984 = vmatpush3.bf16.msra.mxu1 %v3794_v28 }
0x194b   :  { %2991 = vmatprep.subr.bf16.mxu1 %v3366_v23 }
0x1a18   :  { %v1848_v62 = vpop.f32.mrb[26].mxu1 }
0x1a19   :  { %v1852_v14 = vadd.f32 %v1848_v62, %v1635_v61  ;;  %v2793_v1 = vpop.f32.mrb[27].mxu1 }
0x1a1b   :  { %3168 = vtanh.f32 %v1852_v14  ;;  %v2663_v5 = vmul.f32 -1.442695, %v1852_v14 }
0x1a1d   :  { %3170 = vpow2.f32 %v2663_v5 }
0x1a25   :  { %v3169_v3 = vpop.eup %3168 }
0x1a26   :  { %1862 = vrot.lane.b32.xlu1 %v3169_v3, %s3364_s0 }
0x1a27   :  { %v3171_v44 = vpop.eup %3170 }
0x1a28   :  { %v1856_v48 = vadd.f32 1.0, %v3171_v44 }
0x1a2a   :  { %3172 = vrcp.f32 %v1856_v48 }
0x1a34   :  { %v3173_v7 = vpop.eup %3172 }
0x1a35   :  { %v1860_v16 = vmul.f32 %v3173_v7, %v1769_v53 }
0x1a98   :  { %v1863_v63 = vpop.permute.xlu1 %1862 }
0x1a99   :  { %v1865_v15 = vmul.f32 %v3173_v7, %v1863_v63 }
0x1a9b   :  { %1867 = vrot.lane.b32.xlu0 %v1865_v15, %s3365_s2 }
0x1a9f   :  { %1209 = vrot.lane.b32.xlu0 %v3752_v10, %s3364_s0 }
0x1b0d   :  { %v1868_v17 = vpop.permute.xlu0 %1867 }
0x1b0e   :  { %v3836_v18 = vadd.f32 %v1868_v17, %v1860_v16 }
0x1b10   :  { %3174 = vtanh.f32 %v3836_v18 }
0x1b11   :  { %v1210_v60 = vpop.permute.xlu0 %1209  ;;  %3176 = vtanh.f32 %v3782_v47 }
0x1b12   :  { %1212 = vst.msk [vmem:[#allocation3 + $0x10] sm:$0xff] %vm432_vm2, %v1210_v60  ;;  %3178 = vpow2.f32 %v2650_v21 }
0x1b19   :  { %v1517_v19 = vld [vmem:[#allocation3 + $0x10] sm:$0xff] }
0x1b1a   :  { %v3175_v20 = vpop.eup %3174  ;;  %2763 = vmatprep.mubr.msk.f32.mxu0 %vm1538_vm3, %v1517_v19 }
0x1b1b   :  { %1873 = vrot.lane.b32.xlu1 %v3175_v20, %s3364_s0  ;;  %v3177_v10 = vpop.eup %3176 }
0x1b1c   :  { %v3179_v26 = vpop.eup %3178 }
0x1b1d   :  { %v1463_v27 = vadd.f32 1.0, %v3179_v26 }
0x1b1f   :  { %1058 = vrot.lane.b32.xlu1 %v3729_v33, %s3364_s0  ;;  %3180 = vrcp.f32 %v1463_v27 }
0x1b23   :  { %1475 = vrot.lane.b32.xlu1 %v3177_v10, %s3364_s0 }
0x1b29   :  { %v3181_v30 = vpop.eup %3180 }
0x1b2a   :  { %v1471_v32 = vmul.f32 %v3181_v30, %v3768_v36 }
0x1b8d   :  { %v1874_v8 = vpop.permute.xlu1 %1873 }
0x1b8e   :  { %v1876_v9 = vmul.f32 %v3173_v7, %v1874_v8 }
0x1b90   :  { %1879 = vrot.lane.b32.xlu0 %v1876_v9, %s3365_s2 }
0x1b91   :  { %v1059_v29 = vpop.permute.xlu1 %1058 }
0x1b92   :  { %1061 = vst.msk [vmem:[#allocation3 + $0x18] sm:$0xff] %vm432_vm2, %v1059_v29 }
0x1b95   :  { %v1476_v51 = vpop.permute.xlu1 %1475 }
0x1b96   :  { %v1481_v58 = vmul.f32 %v3181_v30, %v1476_v51 }
0x1b98   :  { %1485 = vrot.lane.b32.xlu1 %v1481_v58, %s3365_s2 }
0x1b99   :  { %v1518_v33 = vld [vmem:[#allocation3 + $0x18] sm:$0xff] }
0x1b9a   :  { %2764 = vmatmul.mubr.msk.f32.gmra.mrb[26].mxu0 %vm1538_vm3, %v1518_v33 }
0x1c02   :  { %v1880_v47 = vpop.permute.xlu0 %1879 }
0x1c03   :  { %2803 = vmatmul.mubr.msk.f32.vlgmr.msra.gmra.mrb[28].mxu1 %vm124_vm0, %v1880_v47 }
0x1c04   :  { %2993 = vmatpush3.bf16.msra.mxu1 %v3790_v25  ;;  %2824 = vmatprep.mubr.msk.f32.mxu1 %vm3367_vm1, %v3363_v0 }
0x1c05   :  { %2994 = vmatprep.subr.bf16.mxu1 %v3366_v23 }
0x1c08   :  { %2996 = vmatpush3.bf16.msra.mxu1 %v3794_v28 }
0x1c09   :  { %3003 = vmatprep.subr.bf16.mxu1 %v3366_v23 }
0x1c0a   :  { %v1486_v35 = vpop.permute.xlu1 %1485 }
0x1c0b   :  { %v1491_v2 = vadd.f32 %v1486_v35, %v1471_v32 }
0x1c0d   :  { %3182 = vtanh.f32 %v1491_v2 }
0x1c17   :  { %v3183_v37 = vpop.eup %3182 }
0x1c18   :  { %1497 = vrot.lane.b32.xlu1 %v3183_v37, %s3364_s0 }
0x1c1c   :  { %906 = vrot.lane.b32.xlu1 %v3708_v52, %s3364_s0 }
0x1c20   :  { %588 = vrot.lane.b32.xlu1 %v3664_v31, %s3364_s0 }
0x1c6d   :  { %v3864_v39 = vpop.f32.mrb[26].mxu0 }
0x1c6e   :  { %v1639_v40 = vpop.f32.mrb[27].mxu0  ;;  %v1645_v63 = vadd.f32 %v3864_v39, %v3817_v38 }
0x1c6f   :  { %v1640_v52 = vadd.f32 %v3817_v38, %v1639_v40 }
0x1c8a   :  { %v1498_v13 = vpop.permute.xlu1 %1497 }
0x1c8b   :  { %v1503_v22 = vmul.f32 %v3181_v30, %v1498_v13 }
0x1c8d   :  { %1506 = vrot.lane.b32.xlu1 %v1503_v22, %s3365_s2 }
0x1c8e   :  { %v907_v36 = vpop.permute.xlu1 %906 }
0x1c8f   :  { %910 = vst.msk [vmem:[#allocation3 + $0x20] sm:$0xff] %vm432_vm2, %v907_v36 }
0x1c90   :  { %1056 = vst.msk [vmem:[#allocation3 + $0x20] sm:$0xff] %vm124_vm0, %v3733_v34 }
0x1c92   :  { %v589_v24 = vpop.permute.xlu1 %588 }
0x1c93   :  { %592 = vst.msk [vmem:[#allocation3 + $0x30] sm:$0xff] %vm432_vm2, %v589_v24 }
0x1c94   :  { %1358 = vst.msk [vmem:[#allocation3 + $0x30] sm:$0xff] %vm124_vm0, %v3775_v43 }
0x1c97   :  { %v1519_v31 = vld [vmem:[#allocation3 + $0x20] sm:$0xff] }
0x1c98   :  { %2766 = vmatprep.mubr.msk.f32.mxu0 %vm1538_vm3, %v1519_v31 }
0x1cd6   :  { %v1949_v41 = vpop.f32.mrb[28].mxu1 }
0x1cd7   :  { %v1953_v42 = vadd.f32 %v1949_v41, %v1640_v52  ;;  %v2804_v4 = vpop.f32.mrb[29].mxu1 }
0x1cd9   :  { %3184 = vtanh.f32 %v1953_v42  ;;  %v2665_v54 = vmul.f32 -1.442695, %v1953_v42 }
0x1cdb   :  { %3186 = vpow2.f32 %v2665_v54 }
0x1ce3   :  { %v3185_v46 = vpop.eup %3184 }
0x1ce4   :  { %1963 = vrot.lane.b32.xlu0 %v3185_v46, %s3364_s0 }
0x1ce5   :  { %v3187_v34 = vpop.eup %3186 }
0x1ce6   :  { %v1957_v49 = vadd.f32 1.0, %v3187_v34 }
0x1ce8   :  { %3188 = vrcp.f32 %v1957_v49 }
0x1cf2   :  { %v3189_v56 = vpop.eup %3188 }
0x1cf3   :  { %v1961_v53 = vmul.f32 %v3189_v56, %v3836_v18 }
0x1cff   :  { %v1507_v1 = vpop.permute.xlu1 %1506 }
0x1d56   :  { %v1964_v50 = vpop.permute.xlu0 %1963 }
0x1d57   :  { %v1966_v43 = vmul.f32 %v3189_v56, %v1964_v50 }
0x1d59   :  { %1968 = vrot.lane.b32.xlu0 %v1966_v43, %s3365_s2 }
0x1dcb   :  { %v1969_v6 = vpop.permute.xlu0 %1968 }
0x1dcc   :  { %v1971_v55 = vadd.f32 %v1969_v6, %v1961_v53 }
0x1dce   :  { %3190 = vtanh.f32 %v1971_v55 }
0x1dd8   :  { %v3191_v57 = vpop.eup %3190 }
0x1dd9   :  { %1974 = vrot.lane.b32.xlu0 %v3191_v57, %s3364_s0 }
0x1ddd   :  { %747 = vrot.lane.b32.xlu0 %v3686_v11, %s3364_s0 }
0x1de1   :  { %428 = vrot.lane.b32.xlu0 %v3642_v45, %s3364_s0  ;;  %v1521_v45 = vld [vmem:[#allocation3 + $0x30] sm:$0xff] }
0x1e4b   :  { %v1975_v59 = vpop.permute.xlu0 %1974 }
0x1e4c   :  { %v1977_v61 = vmul.f32 %v3189_v56, %v1975_v59 }
0x1e4e   :  { %1980 = vrot.lane.b32.xlu0 %v1977_v61, %s3365_s2 }
0x1e4f   :  { %v748_v62 = vpop.permute.xlu0 %747 }
0x1e50   :  { %751 = vst.msk [vmem:[#allocation3 + $0x28] sm:$0xff] %vm432_vm2, %v748_v62 }
0x1e51   :  { %1207 = vst.msk [vmem:[#allocation3 + $0x28] sm:$0xff] %vm124_vm0, %v3756_v12 }
0x1e53   :  { %v429_v14 = vpop.permute.xlu0 %428 }
0x1e54   :  { %433 = vst.msk [vmem:[#allocation3 + $0x38] sm:$0xff] %vm432_vm2, %v429_v14 }
0x1e55   :  { %1509 = vst.msk [vmem:[#allocation3 + $0x38] sm:$0xff] %vm124_vm0, %v1507_v1 }
0x1e58   :  { %v1520_v11 = vld [vmem:[#allocation3 + $0x28] sm:$0xff] }
0x1e59   :  { %2767 = vmatmul.mubr.msk.f32.gmra.mrb[28].mxu0 %vm1538_vm3, %v1520_v11  ;;  %v2484_v11 = vld [vmem:[#allocation8] sm:$0xff] }
0x1e5a   :  { %2769 = vmatprep.mubr.msk.f32.mxu0 %vm1538_vm3, %v1521_v45  ;;  %v2485_v45 = vld [vmem:[#allocation8 + $0x8] sm:$0xff] }
0x1e5c   :  { %v3891_v3 = vld [vmem:[#allocation3 + $0x38] sm:$0xff] }
0x1e5d   :  { %2770 = vmatmul.mubr.msk.f32.gmra.mrb[30].mxu0 %vm1538_vm3, %v3891_v3 }
0x1e5e   :  { %2813 = vmatprep.mubr.msk.f32.mxu0 %vm3367_vm1, %v3363_v0 }
0x1ec0   :  { %v1981_v12 = vpop.permute.xlu0 %1980 }
0x1ec1   :  { %2814 = vmatmul.mubr.msk.f32.vlgmr.msra.gmra.mrb[32].mxu0 %vm124_vm0, %v1981_v12  ;;  %v3016_v12 = vpack.c.bf16 %v2485_v45, %v2484_v11 }
0x1ec2   :  { %2999 = vmatpush3.bf16.msra.mxu0 %v3790_v25  ;;  %2835 = vmatprep.mubr.msk.f32.mxu0 %vm3367_vm1, %v3363_v0 }
0x1ec3   :  { %3000 = vmatprep.subr.bf16.mxu0 %v3366_v23 }
0x1ec6   :  { %3002 = vmatpush3.bf16.msra.mxu0 %v3794_v28 }
0x1ec7   :  { %3009 = vmatprep.subr.bf16.mxu0 %v3366_v23 }
0x1f2c   :  { %v3904_v5 = vpop.f32.mrb[28].mxu0 }
0x1f2d   :  { %v1649_v44 = vpop.f32.mrb[29].mxu0  ;;  %v1655_v54 = vadd.f32 %v3904_v5, %v3817_v38  ;;  %v2486_v5 = vld [vmem:[#allocation8 + $0x10] sm:$0xff] }
0x1f2e   :  { %v1650_v33 = vadd.f32 %v3817_v38, %v1649_v44  ;;  %v2487_v44 = vld [vmem:[#allocation8 + $0x18] sm:$0xff] }
0x1f30   :  { %v3906_v48 = vpop.f32.mrb[30].mxu0 }
0x1f31   :  { %v3908_v7 = vpop.f32.mrb[31].mxu0 }
0x1f94   :  { %v2050_v15 = vpop.f32.mrb[32].mxu0 }
0x1f95   :  { %v2054_v16 = vadd.f32 %v2050_v15, %v1645_v63  ;;  %v2815_v17 = vpop.f32.mrb[33].mxu0  ;;  %v3019_v15 = vpack.c.bf16 %v2487_v44, %v2486_v5 }
0x1f96   :  { %v2489_v17 = vld [vmem:[#allocation8 + $0x28] sm:$0xff] }
0x1f97   :  { %3192 = vtanh.f32 %v2054_v16  ;;  %v2667_v60 = vmul.f32 -1.442695, %v2054_v16  ;;  %v2488_v16 = vld [vmem:[#allocation8 + $0x20] sm:$0xff] }
0x1f99   :  { %3194 = vpow2.f32 %v2667_v60  ;;  %v2490_v60 = vld [vmem:[#allocation8 + $0x30] sm:$0xff] }
0x1fa1   :  { %v3193_v18 = vpop.eup %3192 }
0x1fa2   :  { %2064 = vrot.lane.b32.xlu1 %v3193_v18, %s3364_s0  ;;  %v3022_v18 = vpack.c.bf16 %v2489_v17, %v2488_v16 }
0x1fa3   :  { %v3195_v19 = vpop.eup %3194 }
0x1fa4   :  { %v2058_v20 = vadd.f32 1.0, %v3195_v19  ;;  %v2491_v19 = vld [vmem:[#allocation8 + $0x38] sm:$0xff] }
0x1fa6   :  { %3196 = vrcp.f32 %v2058_v20  ;;  %v3025_v20 = vpack.c.bf16 %v2491_v19, %v2490_v60 }
0x1fb0   :  { %v3197_v10 = vpop.eup %3196 }
0x1fb1   :  { %v2062_v27 = vmul.f32 %v3197_v10, %v1971_v55 }
0x2014   :  { %v2065_v21 = vpop.permute.xlu1 %2064 }
0x2015   :  { %v2067_v26 = vmul.f32 %v3197_v10, %v2065_v21 }
0x2017   :  { %2069 = vrot.lane.b32.xlu0 %v2067_v26, %s3365_s2 }
0x2089   :  { %v2070_v8 = vpop.permute.xlu0 %2069 }
0x208a   :  { %v2072_v9 = vadd.f32 %v2070_v8, %v2062_v27 }
0x208c   :  { %3198 = vtanh.f32 %v2072_v9 }
0x2096   :  { %v3199_v29 = vpop.eup %3198 }
0x2097   :  { %2075 = vrot.lane.b32.xlu1 %v3199_v29, %s3364_s0 }
0x2109   :  { %v2076_v30 = vpop.permute.xlu1 %2075 }
0x210a   :  { %v2078_v51 = vmul.f32 %v3197_v10, %v2076_v30 }
0x210c   :  { %2081 = vrot.lane.b32.xlu0 %v2078_v51, %s3365_s2 }
0x217e   :  { %v2082_v58 = vpop.permute.xlu0 %2081 }
0x217f   :  { %2825 = vmatmul.mubr.msk.f32.vlgmr.msra.gmra.mrb[30].mxu1 %vm124_vm0, %v2082_v58 }
0x2180   :  { %3005 = vmatpush3.bf16.msra.mxu1 %v3790_v25  ;;  %2846 = vmatprep.mubr.msk.f32.mxu1 %vm3367_vm1, %v3363_v0 }
0x2181   :  { %3006 = vmatprep.subr.bf16.mxu1 %v3366_v23 }
0x2184   :  { %3008 = vmatpush3.bf16.msra.mxu1 %v3794_v28 }
0x2185   :  { %3015 = vmatprep.subr.bf16.mxu1 %v3366_v23 }
0x2252   :  { %v2151_v47 = vpop.f32.mrb[30].mxu1 }
0x2253   :  { %v2155_v32 = vadd.f32 %v2151_v47, %v1650_v33  ;;  %v2826_v35 = vpop.f32.mrb[31].mxu1 }
0x2255   :  { %3200 = vtanh.f32 %v2155_v32  ;;  %v2669_v37 = vmul.f32 -1.442695, %v2155_v32 }
0x2257   :  { %3202 = vpow2.f32 %v2669_v37 }
0x225f   :  { %v3201_v2 = vpop.eup %3200 }
0x2260   :  { %2165 = vrot.lane.b32.xlu1 %v3201_v2, %s3364_s0 }
0x2261   :  { %v3203_v39 = vpop.eup %3202 }
0x2262   :  { %v2159_v40 = vadd.f32 1.0, %v3203_v39  ;;  %v1665_v39 = vadd.f32 %v3906_v48, %v3817_v38 }
0x2264   :  { %3204 = vrcp.f32 %v2159_v40  ;;  %v2676_v40 = vld [vmem:[#allocation9] ss:$0 sm:$0xff] }
0x226e   :  { %v3205_v13 = vpop.eup %3204 }
0x226f   :  { %v2163_v24 = vmul.f32 %v3205_v13, %v2072_v9 }
0x22d2   :  { %v2166_v22 = vpop.permute.xlu1 %2165 }
0x22d3   :  { %v2168_v36 = vmul.f32 %v3205_v13, %v2166_v22 }
0x22d5   :  { %2170 = vrot.lane.b32.xlu0 %v2168_v36, %s3365_s2 }
0x2347   :  { %v2171_v31 = vpop.permute.xlu0 %2170 }
0x2348   :  { %v2173_v52 = vadd.f32 %v2171_v31, %v2163_v24 }
0x234a   :  { %3206 = vtanh.f32 %v2173_v52 }
0x2354   :  { %v3207_v41 = vpop.eup %3206 }
0x2355   :  { %2176 = vrot.lane.b32.xlu1 %v3207_v41, %s3364_s0 }
0x23c7   :  { %v2177_v42 = vpop.permute.xlu1 %2176 }
0x23c8   :  { %v2179_v4 = vmul.f32 %v3205_v13, %v2177_v42 }
0x23ca   :  { %2182 = vrot.lane.b32.xlu0 %v2179_v4, %s3365_s2 }
0x243c   :  { %v2183_v46 = vpop.permute.xlu0 %2182 }
0x243d   :  { %2836 = vmatmul.mubr.msk.f32.vlgmr.msra.gmra.mrb[34].mxu0 %vm124_vm0, %v2183_v46 }
0x243e   :  { %3011 = vmatpush3.bf16.msra.mxu0 %v3790_v25  ;;  %2857 = vmatprep.mubr.msk.f32.mxu0 %vm3367_vm1, %v3363_v0 }
0x243f   :  { %3012 = vmatprep.subr.bf16.mxu0 %v3366_v23 }
0x2442   :  { %3014 = vmatpush3.bf16.msra.mxu0 %v3794_v28 }
0x2510   :  { %v2252_v34 = vpop.f32.mrb[34].mxu0 }
0x2511   :  { %v2256_v49 = vadd.f32 %v2252_v34, %v1655_v54  ;;  %v2837_v56 = vpop.f32.mrb[35].mxu0 }
0x2513   :  { %3208 = vtanh.f32 %v2256_v49  ;;  %v2671_v43 = vmul.f32 -1.442695, %v2256_v49 }
0x2515   :  { %3210 = vpow2.f32 %v2671_v43 }
0x251d   :  { %v3209_v50 = vpop.eup %3208 }
0x251e   :  { %2266 = vrot.lane.b32.xlu1 %v3209_v50, %s3364_s0 }
0x251f   :  { %v3211_v25 = vpop.eup %3210 }
0x2520   :  { %v2260_v53 = vadd.f32 1.0, %v3211_v25 }
0x2522   :  { %3212 = vrcp.f32 %v2260_v53 }
0x252c   :  { %v3213_v6 = vpop.eup %3212 }
0x252d   :  { %v2264_v28 = vmul.f32 %v3213_v6, %v2173_v52 }
0x2590   :  { %v2267_v55 = vpop.permute.xlu1 %2266 }
0x2591   :  { %v2269_v57 = vmul.f32 %v3213_v6, %v2267_v55 }
0x2593   :  { %2271 = vrot.lane.b32.xlu0 %v2269_v57, %s3365_s2 }
0x2605   :  { %v2272_v59 = vpop.permute.xlu0 %2271 }
0x2606   :  { %v2274_v61 = vadd.f32 %v2272_v59, %v2264_v28 }
0x2608   :  { %3214 = vtanh.f32 %v2274_v61 }
0x2612   :  { %v3215_v62 = vpop.eup %3214 }
0x2613   :  { %2277 = vrot.lane.b32.xlu1 %v3215_v62, %s3364_s0 }
0x2685   :  { %v2278_v14 = vpop.permute.xlu1 %2277 }
0x2686   :  { %v2280_v1 = vmul.f32 %v3213_v6, %v2278_v14 }
0x2688   :  { %2283 = vrot.lane.b32.xlu0 %v2280_v1, %s3365_s2 }
0x26fa   :  { %v2284_v63 = vpop.permute.xlu0 %2283 }
0x26fb   :  { %2847 = vmatmul.mubr.msk.f32.vlgmr.msra.gmra.mrb[32].mxu1 %vm124_vm0, %v2284_v63 }
0x26fc   :  { %3017 = vmatpush3.bf16.msra.mxu1 %v3016_v12  ;;  %2876 = vmatprep.mubr.msk.f32.mxu1 %vm3367_vm1, %v3363_v0  ;;  %v1660_v0 = vadd.f32 %v3817_v38, %v3908_v7 }
0x26fd   :  { %3018 = vmatprep.subr.bf16.mxu1 %v3366_v23 }
0x2700   :  { %3020 = vmatpush3.bf16.msra.mxu1 %v3019_v15 }
0x2701   :  { %3021 = vmatprep.subr.bf16.mxu1 %v3366_v23 }
0x2704   :  { %3023 = vmatpush3.bf16.msra.mxu1 %v3022_v18 }
0x2705   :  { %3024 = vmatprep.subr.bf16.mxu1 %v3366_v23 }
0x2708   :  { %3026 = vmatpush3.bf16.msra.mxu1 %v3025_v20 }
0x270b   :  { %2877 = vmatmul.mubr.msk.f32.vlgmr.msra.gmra.mrb[34].mxu1 %vm1538_vm3, %v3891_v3 }
0x27ce   :  { %v2353_v10 = vpop.f32.mrb[32].mxu1 }
0x27cf   :  { %v2357_v21 = vadd.f32 %v2353_v10, %v1660_v0  ;;  %v2848_v26 = vpop.f32.mrb[33].mxu1 }
0x27d1   :  { %3216 = vtanh.f32 %v2357_v21  ;;  %v2673_v29 = vmul.f32 -1.442695, %v2357_v21 }
0x27d3   :  { %3218 = vpow2.f32 %v2673_v29 }
0x27db   :  { %v3217_v27 = vpop.eup %3216 }
0x27dc   :  { %2367 = vrot.lane.b32.xlu1 %v3217_v27, %s3364_s0 }
0x27dd   :  { %v3219_v30 = vpop.eup %3218 }
0x27de   :  { %v2568_v8 = vpop.f32.mrb[34].mxu1  ;;  %v2361_v23 = vadd.f32 1.0, %v3219_v30 }
0x27df   :  { %v2878_v9 = vpop.f32.mrb[35].mxu1  ;;  %v2569_v24 = vadd.f32 %v2676_v40, %v2568_v8 }
0x27e0   :  { %3220 = vrcp.f32 %v2361_v23 }
0x27e1   :  { %v2678_v42 = vmul.f32 -1.442695, %v2569_v24 }
0x27ea   :  { %v3221_v51 = vpop.eup %3220 }
0x27eb   :  { %v2365_v7 = vmul.f32 %v3221_v51, %v2274_v61 }
0x284e   :  { %v2368_v58 = vpop.permute.xlu1 %2367 }
0x284f   :  { %v2370_v3 = vmul.f32 %v3221_v51, %v2368_v58 }
0x2851   :  { %2372 = vrot.lane.b32.xlu0 %v2370_v3, %s3365_s2 }
0x28c3   :  { %v2373_v33 = vpop.permute.xlu0 %2372 }
0x28c4   :  { %v2375_v47 = vadd.f32 %v2373_v33, %v2365_v7 }
0x28c6   :  { %3222 = vtanh.f32 %v2375_v47 }
0x28d0   :  { %v3223_v32 = vpop.eup %3222 }
0x28d1   :  { %2378 = vrot.lane.b32.xlu1 %v3223_v32, %s3364_s0 }
0x2943   :  { %v2379_v35 = vpop.permute.xlu1 %2378 }
0x2944   :  { %v2381_v2 = vmul.f32 %v3221_v51, %v2379_v35 }
0x2946   :  { %2384 = vrot.lane.b32.xlu0 %v2381_v2, %s3365_s2 }
0x29b8   :  { %v2385_v37 = vpop.permute.xlu0 %2384 }
0x29b9   :  { %2858 = vmatmul.mubr.msk.f32.vlgmr.msra.gmra.mrb[36].mxu0 %vm124_vm0, %v2385_v37 }
0x2a8c   :  { %v2454_v13 = vpop.f32.mrb[36].mxu0 }
0x2a8d   :  { %v2458_v22 = vadd.f32 %v2454_v13, %v1665_v39  ;;  %v2859_v36 = vpop.f32.mrb[37].mxu0 }
0x2a8f   :  { %3224 = vtanh.f32 %v2458_v22  ;;  %v2675_v41 = vmul.f32 -1.442695, %v2458_v22 }
0x2a90   :  { %3226 = vtanh.f32 %v2569_v24 }
0x2a91   :  { %3228 = vpow2.f32 %v2675_v41 }
0x2a92   :  { %3230 = vpow2.f32 %v2678_v42 }
0x2a99   :  { %v3225_v31 = vpop.eup %3224 }
0x2a9a   :  { %2468 = vrot.lane.b32.xlu1 %v3225_v31, %s3364_s0  ;;  %v3227_v52 = vpop.eup %3226 }
0x2a9b   :  { %v3229_v4 = vpop.eup %3228 }
0x2a9c   :  { %v2462_v46 = vadd.f32 1.0, %v3229_v4  ;;  %v3231_v38 = vpop.eup %3230 }
0x2a9d   :  { %v2575_v48 = vadd.f32 1.0, %v3231_v38 }
0x2a9e   :  { %2580 = vrot.lane.b32.xlu1 %v3227_v52, %s3364_s0  ;;  %3232 = vrcp.f32 %v2462_v46 }
0x2a9f   :  { %3234 = vrcp.f32 %v2575_v48 }
0x2aa8   :  { %v3233_v54 = vpop.eup %3232 }
0x2aa9   :  { %v3235_v56 = vpop.eup %3234  ;;  %v2466_v53 = vmul.f32 %v3233_v54, %v2375_v47 }
0x2b0c   :  { %v2469_v34 = vpop.permute.xlu1 %2468 }
0x2b0d   :  { %v2471_v49 = vmul.f32 %v3233_v54, %v2469_v34 }
0x2b0f   :  { %2473 = vrot.lane.b32.xlu0 %v2471_v49, %s3365_s2 }
0x2b10   :  { %v2581_v50 = vpop.permute.xlu1 %2580 }
0x2b11   :  { %v2583_v43 = vmul.f32 %v3235_v56, %v2581_v50 }
0x2b13   :  { %3236 = vtanh.f32 %v2583_v43 }
0x2b1d   :  { %v3237_v25 = vpop.eup %3236 }
0x2b1e   :  { %2586 = vrot.lane.b32.xlu1 %v3237_v25, %s3368_s24 }
0x2b81   :  { %v2474_v6 = vpop.permute.xlu0 %2473 }
0x2b82   :  { %v2476_v55 = vadd.f32 %v2474_v6, %v2466_v53 }
0x2b84   :  { %3238 = vtanh.f32 %v2476_v55 }
0x2b8e   :  { %v3239_v57 = vpop.eup %3238 }
0x2b8f   :  { %2479 = vrot.lane.b32.xlu0 %v3239_v57, %s3364_s0 }
0x2b90   :  { %v2587_v28 = vpop.permute.xlu1 %2586 }
0x2b91   :  { %v2589_v59 = vmul.f32 %v3235_v56, %v2587_v28 }
0x2b93   :  { %2595 = vrot.lane.b32.xlu1 %v2589_v59, %s3364_s0 }
0x2c01   :  { %v2480_v61 = vpop.permute.xlu0 %2479 }
0x2c02   :  { %v2482_v62 = vmul.f32 %v3233_v54, %v2480_v61 }
0x2c04   :  { %2591 = vrot.lane.b32.xlu0 %v2482_v62, %s3365_s2 }
0x2c05   :  { %v2596_v14 = vpop.permute.xlu1 %2595 }
0x2c76   :  { %v2592_v1 = vpop.permute.xlu0 %2591 }
0x2c77   :  { %v2598_v11 = vsel %vm124_vm0, %v2592_v1, %v2596_v14 }
0x2c78   :  { %2599 = vst.msk [vmem:[%s3977_s9] sm:$0xff] %vm1538_vm3, %v2598_v11 }
0x2c79   :  { %2604 = vsyncpa [#allocation5], 1 }
0x2c7a   :  { %2605 = vsyncpa [#allocation7], 1 }
0x2c7b   :  { %2606 = vsyncpa [#allocation10], 1 }

</bundles_post_ra>
